<compile_context>
chip_gen: v6e
topology: v6e:2x2x1
jax: 0.10.0
libtpu: 0.0.40
codegen_flags: <defaults>
</compile_context>

<pallas_src>
import jax
import jax.numpy as jnp
from jax import lax
from jax.experimental import pallas as pl
from jax.experimental.pallas import tpu as pltpu

# ---------------- synthetic BERT config (small) ----------------
VOCAB_SIZE = 100
HIDDEN = 32
NUM_LAYERS = 2
NUM_HEADS = 2
HEAD_DIM = HIDDEN // NUM_HEADS
FFN = 64
MAX_POS = 16
TYPE_VOCAB = 2
LN_EPS = 1e-12

BATCH = 2
SEQ = 8

_VMEM_SPEC = pl.BlockSpec(memory_space=pltpu.MemorySpace.VMEM)


# ---------------- in-kernel helpers (operate on VMEM values) ----------------
def _mm(a, b):
    """MXU matmul, bf16 operands (no-op cast for prepacked bf16 weights), f32 acc."""
    return jnp.dot(a.astype(jnp.bfloat16), b.astype(jnp.bfloat16),
                   preferred_element_type=jnp.float32)


def _layernorm(h, g, b):
    """LayerNorm over the last (hidden) axis, eps = 1e-12 (BERT default), f32."""
    mean = jnp.mean(h, axis=-1, keepdims=True)
    var = jnp.mean((h - mean) * (h - mean), axis=-1, keepdims=True)
    return (h - mean) * lax.rsqrt(var + LN_EPS) * g + b


def _gelu_tanh(x):
    """tanh-approx GELU (EUP-friendly); small delta vs torch's exact erf GELU."""
    return 0.5 * x * (1.0 + jnp.tanh(0.7978845608028654 * (x + 0.044715 * x * x * x)))


# ---------------- the fused whole-model kernel ----------------
def _finbert_kernel(ids_ref, mask_ref, mtile_ref, struct_ref, cls_sel_ref,
                    word_emb_ref, pos_type_ref, emb_g_ref, emb_b_ref,
                    qkv_w_ref, qkv_b_ref, o_b_ref,
                    ln1_g_ref, ln1_b_ref, i_w_ref, i_b_ref,
                    f_w_ref, f_b_ref, ln2_g_ref, ln2_b_ref,
                    pool_w_ref, pool_b_ref, reg_w_ref, reg_b_ref,
                    out_ref):
    bs = ids_ref.shape[0]                       # B*S tokens
    vocab = word_emb_ref.shape[0]
    num_layers = qkv_w_ref.shape[0]
    hw = 2 * HEAD_DIM + HIDDEN                  # per-head packed width: [q | k | v@Wo]

    # ---- embeddings: one-hot gather-as-matmul + (pos+type) add + LayerNorm ----
    # TODO(synk): at real vocab (~30k) the one-hot matmul should become a DMA gather.
    onehot = jnp.where(
        lax.broadcasted_iota(jnp.int32, (bs, vocab), 1) == ids_ref[...],
        1.0, 0.0).astype(jnp.bfloat16)                                   # (BS, V)
    emb = jnp.dot(onehot, word_emb_ref[...],
                  preferred_element_type=jnp.float32) + pos_type_ref[...]
    h = _layernorm(emb, emb_g_ref[...], emb_b_ref[...])                  # (BS, H) f32

    # ---- additive attention bias, built ONCE, reused by every layer ----
    # columns are (head, key)-major; struct is block-diagonal over (head, batch);
    # the mask term knocks out padded keys.  mask_tiled[0, h*BS+k] = mask[k].
    mask_tiled = jnp.dot(mask_ref[...].astype(jnp.bfloat16), mtile_ref[...],
                         preferred_element_type=jnp.float32)             # (1, NH*BS)
    bias = struct_ref[...] + (mask_tiled - 1.0) * 1e9                    # (NH*BS, NH*BS)

    # ---- encoder layers (static Python unroll) ----
    for li in range(num_layers):
        # fused QKV(+folded W_o) projection; columns grouped per head, Q pre-scaled
        qkv = _mm(h, qkv_w_ref[li]) + qkv_b_ref[li]                      # (BS, NH*hw)
        # restack heads along the sublane (token) axis -> (NH*BS, hw)
        qkv_hm = jnp.concatenate(
            [qkv[:, hd * hw:(hd + 1) * hw] for hd in range(NUM_HEADS)], axis=0)
        q = qkv_hm[:, :HEAD_DIM]                                         # (NH*BS, Dh)
        k = qkv_hm[:, HEAD_DIM:2 * HEAD_DIM]                             # (NH*BS, Dh)
        v = qkv_hm[:, 2 * HEAD_DIM:]                                     # (NH*BS, H), W_o folded

        # ONE score matmul / softmax / P.V matmul for all heads
        s = jnp.einsum("qd,kd->qk", q.astype(jnp.bfloat16), k.astype(jnp.bfloat16),
                       preferred_element_type=jnp.float32) + bias        # (NH*BS, NH*BS)
        s = s - jnp.max(s, axis=-1, keepdims=True)
        p = jnp.exp(s)
        p = p * pl.reciprocal(jnp.sum(p, axis=-1, keepdims=True), approx=True)
        ctx = _mm(p, v)                                                  # (NH*BS, H)

        # head "concat @ W_o" is now just a sum over sublane blocks
        attn = ctx[:bs, :]
        for hd in range(1, NUM_HEADS):
            attn = attn + ctx[hd * bs:(hd + 1) * bs, :]
        h = _layernorm(attn + o_b_ref[li] + h, ln1_g_ref[li], ln1_b_ref[li])

        # feed-forward
        inter = _gelu_tanh(_mm(h, i_w_ref[li]) + i_b_ref[li])            # (BS, FFN)
        h = _layernorm(_mm(inter, f_w_ref[li]) + f_b_ref[li] + h,
                       ln2_g_ref[li], ln2_b_ref[li])

    # ---- pooler (CLS rows via one-hot selection matmul) + regressor head ----
    cls = jnp.dot(cls_sel_ref[...], h, preferred_element_type=jnp.float32)   # (B, H)
    pooled = jnp.tanh(_mm(cls, pool_w_ref[...]) + pool_b_ref[...])           # (B, H)
    out = jnp.sum(pooled * reg_w_ref[...], axis=-1, keepdims=True) + reg_b_ref[...]
    out_ref[...] = out.astype(out_ref.dtype)                                  # (B, 1)


# ---------------- deterministic parameter init (torch-style f32 layout) ----------------
def init_params(key):
    def nrm(k, shape, scale=0.02):
        return scale * jax.random.normal(k, shape, dtype=jnp.float32)

    keys = jax.random.split(key, 8 + NUM_LAYERS)
    params = {
        "word_emb": nrm(keys[0], (VOCAB_SIZE, HIDDEN)),
        "pos_emb": nrm(keys[1], (MAX_POS, HIDDEN)),
        "type_emb": nrm(keys[2], (TYPE_VOCAB, HIDDEN)),
        "emb_ln_g": jnp.ones((HIDDEN,), jnp.float32),
        "emb_ln_b": jnp.zeros((HIDDEN,), jnp.float32),
        "pool_w": nrm(keys[3], (HIDDEN, HIDDEN)),
        "pool_b": jnp.zeros((HIDDEN,), jnp.float32),
        "reg_w": nrm(keys[4], (HIDDEN, 1)),
        "reg_b": jnp.zeros((1,), jnp.float32),
        "layers": [],
    }
    for li in range(NUM_LAYERS):
        lk = jax.random.split(keys[8 + li], 6)
        params["layers"].append({
            "q_w": nrm(lk[0], (HIDDEN, HIDDEN)), "q_b": jnp.zeros((HIDDEN,), jnp.float32),
            "k_w": nrm(lk[1], (HIDDEN, HIDDEN)), "k_b": jnp.zeros((HIDDEN,), jnp.float32),
            "v_w": nrm(lk[2], (HIDDEN, HIDDEN)), "v_b": jnp.zeros((HIDDEN,), jnp.float32),
            "o_w": nrm(lk[3], (HIDDEN, HIDDEN)), "o_b": jnp.zeros((HIDDEN,), jnp.float32),
            "ln1_g": jnp.ones((HIDDEN,), jnp.float32), "ln1_b": jnp.zeros((HIDDEN,), jnp.float32),
            "i_w": nrm(lk[4], (HIDDEN, FFN)), "i_b": jnp.zeros((FFN,), jnp.float32),
            "f_w": nrm(lk[5], (FFN, HIDDEN)), "f_b": jnp.zeros((HIDDEN,), jnp.float32),
            "ln2_g": jnp.ones((HIDDEN,), jnp.float32), "ln2_b": jnp.zeros((HIDDEN,), jnp.float32),
        })
    return params


# ---------------- ONE-TIME weight packing (NOT inside the per-call jit) ----------------
def prepack_params(params, batch=BATCH, seq=SEQ):
    """Pack weights into the kernel layout: bf16 matmul weights, fused per-head
    [Q*scale | K | V@W_o] projection, stacked per-layer tensors, and the constant
    (batch, seq)-dependent helpers (bias structure, mask tiler, CLS selector,
    pos+type embedding slab)."""
    dh = HEAD_DIM
    scale = 1.0 / (dh ** 0.5)
    bs = batch * seq
    nhbs = NUM_HEADS * bs

    qkv_w, qkv_b, o_b = [], [], []
    ln1_g, ln1_b, i_w, i_b, f_w, f_b, ln2_g, ln2_b = [], [], [], [], [], [], [], []
    for l in params["layers"]:
        blk_w, blk_b = [], []
        for hd in range(NUM_HEADS):
            sl = slice(hd * dh, (hd + 1) * dh)
            o_w_h = l["o_w"][sl, :]                                     # (Dh, H)
            blk_w.append(jnp.concatenate(
                [l["q_w"][:, sl] * scale, l["k_w"][:, sl], l["v_w"][:, sl] @ o_w_h], axis=1))
            blk_b.append(jnp.concatenate(
                [l["q_b"][sl] * scale, l["k_b"][sl], l["v_b"][sl] @ o_w_h]))
        qkv_w.append(jnp.concatenate(blk_w, axis=1))                    # (H, NH*(2Dh+H))
        qkv_b.append(jnp.concatenate(blk_b))                            # (NH*(2Dh+H),)
        o_b.append(l["o_b"]); ln1_g.append(l["ln1_g"]); ln1_b.append(l["ln1_b"])
        i_w.append(l["i_w"]); i_b.append(l["i_b"])
        f_w.append(l["f_w"]); f_b.append(l["f_b"])
        ln2_g.append(l["ln2_g"]); ln2_b.append(l["ln2_b"])

    def st_w(xs):                                   # stacked bf16 matmul weights
        return jnp.stack(xs).astype(jnp.bfloat16)

    def st_v(xs):                                   # stacked f32 (L, 1, D) vectors
        return jnp.stack(xs)[:, None, :].astype(jnp.float32)

    # constants depending only on (batch, seq) / config
    row = jnp.arange(nhbs)
    same = ((row[:, None] // bs) == (row[None, :] // bs)) & \
           (((row[:, None] % bs) // seq) == ((row[None, :] % bs) // seq))
    struct_bias = jnp.where(same, 0.0, -1e9).astype(jnp.float32)        # (NH*BS, NH*BS)
    mtile = ((jnp.arange(nhbs)[None, :] % bs)
             == jnp.arange(bs)[:, None]).astype(jnp.bfloat16)           # (BS, NH*BS)
    cls_sel = (jnp.arange(bs)[None, :]
               == (jnp.arange(batch) * seq)[:, None]).astype(jnp.float32)   # (B, BS)
    # token_type_ids fixed to 0 (matches the reference usage)
    pos_type = (jnp.tile(params["pos_emb"][:seq], (batch, 1))
                + params["type_emb"][0][None, :]).astype(jnp.float32)   # (BS, H)

    return (mtile, struct_bias, cls_sel,
            params["word_emb"].astype(jnp.bfloat16), pos_type,
            params["emb_ln_g"].reshape(1, HIDDEN).astype(jnp.float32),
            params["emb_ln_b"].reshape(1, HIDDEN).astype(jnp.float32),
            st_w(qkv_w), st_v(qkv_b), st_v(o_b),
            st_v(ln1_g), st_v(ln1_b), st_w(i_w), st_v(i_b),
            st_w(f_w), st_v(f_b), st_v(ln2_g), st_v(ln2_b),
            params["pool_w"].astype(jnp.bfloat16),
            params["pool_b"].reshape(1, HIDDEN).astype(jnp.float32),
            params["reg_w"].reshape(1, HIDDEN).astype(jnp.float32),
            params["reg_b"].reshape(1, 1).astype(jnp.float32))


# ---------------- forward pass (FinBERTRegressor.forward) ----------------
@jax.jit
def finbert_regressor_forward(packed, input_ids, attention_mask):
    B, S = input_ids.shape
    ids = input_ids.reshape(B * S, 1).astype(jnp.int32)        # per-token vocab id
    mask = attention_mask.reshape(1, B * S).astype(jnp.float32)  # 1=attend, 0=pad

    args = (ids, mask) + tuple(packed)
    # single grid-less pallas_call: everything VMEM-resident, one HBM store of (B, 1).
    # (v7x option: batch-parallel grid axis; at real FinBERT scale: layer grid axis
    #  with streamed bf16 weight BlockSpecs + pltpu.CompilerParams(vmem_limit_bytes).)
    return pl.pallas_call(
        _finbert_kernel,
        out_shape=jax.ShapeDtypeStruct((B, 1), jnp.float32),
        in_specs=[_VMEM_SPEC] * len(args),
        out_specs=_VMEM_SPEC,
    )(*args)


if __name__ == "__main__":
    key = jax.random.PRNGKey(0)
    pkey, ikey = jax.random.split(key)

    params = init_params(pkey)
    packed = prepack_params(params)          # one-time packing, outside the per-call jit

    input_ids = jax.random.randint(ikey, (BATCH, SEQ), 0, VOCAB_SIZE, dtype=jnp.int32)
    # last two tokens of batch 1 are padding (mask == 0); CLS is never padded
    attention_mask = jnp.array([[1] * SEQ,
                                [1] * (SEQ - 2) + [0, 0]], dtype=jnp.int32)

    out = finbert_regressor_forward(packed, input_ids, attention_mask)
    out = jax.block_until_ready(out)
    assert out.shape == (BATCH, 1) and out.dtype == jnp.float32
    print("KERNEL_OK")
</pallas_src>

<mosaic_0001>
module attributes {stable_mosaic.version = 11 : i64} {
  func.func @_finbert_kernel(%arg0: memref<16x1xi32, #tpu.memory_space<vmem>>, %arg1: memref<1x16xf32, #tpu.memory_space<vmem>>, %arg2: memref<16x32xbf16, #tpu.memory_space<vmem>>, %arg3: memref<32x32xf32, #tpu.memory_space<vmem>>, %arg4: memref<2x16xf32, #tpu.memory_space<vmem>>, %arg5: memref<100x32xbf16, #tpu.memory_space<vmem>>, %arg6: memref<16x32xf32, #tpu.memory_space<vmem>>, %arg7: memref<1x32xf32, #tpu.memory_space<vmem>>, %arg8: memref<1x32xf32, #tpu.memory_space<vmem>>, %arg9: memref<2x32x128xbf16, #tpu.memory_space<vmem>>, %arg10: memref<2x1x128xf32, #tpu.memory_space<vmem>>, %arg11: memref<2x1x32xf32, #tpu.memory_space<vmem>>, %arg12: memref<2x1x32xf32, #tpu.memory_space<vmem>>, %arg13: memref<2x1x32xf32, #tpu.memory_space<vmem>>, %arg14: memref<2x32x64xbf16, #tpu.memory_space<vmem>>, %arg15: memref<2x1x64xf32, #tpu.memory_space<vmem>>, %arg16: memref<2x64x32xbf16, #tpu.memory_space<vmem>>, %arg17: memref<2x1x32xf32, #tpu.memory_space<vmem>>, %arg18: memref<2x1x32xf32, #tpu.memory_space<vmem>>, %arg19: memref<2x1x32xf32, #tpu.memory_space<vmem>>, %arg20: memref<32x32xbf16, #tpu.memory_space<vmem>>, %arg21: memref<1x32xf32, #tpu.memory_space<vmem>>, %arg22: memref<1x32xf32, #tpu.memory_space<vmem>>, %arg23: memref<1x1xf32, #tpu.memory_space<vmem>>, %arg24: memref<2x1xf32, #tpu.memory_space<vmem>>) attributes {dimension_semantics = [], scalar_prefetch = 0 : i64, scratch_operands = 0 : i64, tpu.core_type = #tpu.core_type<tc>} {
    %0 = tpu.iota {dimensions = array<i32: 1>} : vector<16x100xi32>
    %c0 = arith.constant 0 : index
    %c0_0 = arith.constant 0 : index
    %1 = vector.load %arg0[%c0, %c0_0] : memref<16x1xi32, #tpu.memory_space<vmem>>, vector<16x1xi32>
    %2 = vector.broadcast %1 : vector<16x1xi32> to vector<16x100xi32>
    %3 = arith.cmpi eq, %0, %2 : vector<16x100xi32>
    %cst = arith.constant 1.000000e+00 : f32
    %cst_1 = arith.constant 0.000000e+00 : f32
    %4 = vector.broadcast %cst : f32 to vector<16x100xf32>
    %5 = vector.broadcast %cst_1 : f32 to vector<16x100xf32>
    %6 = arith.select %3, %4, %5 : vector<16x100xi1>, vector<16x100xf32>
    %7 = arith.truncf %6 : vector<16x100xf32> to vector<16x100xbf16>
    %c0_2 = arith.constant 0 : index
    %c0_3 = arith.constant 0 : index
    %8 = vector.load %arg5[%c0_2, %c0_3] : memref<100x32xbf16, #tpu.memory_space<vmem>>, vector<100x32xbf16>
    %cst_4 = arith.constant dense<0.000000e+00> : vector<16x32xf32>
    %9 = tpu.matmul %7, %8, %cst_4 {dimension_numbers = #tpu.dot_dimension_numbers<[1], [0], [0], [1], [0, 0, 1, 1], [], []>} : vector<16x100xbf16>, vector<100x32xbf16>, vector<16x32xf32> -> vector<16x32xf32>
    %c0_5 = arith.constant 0 : index
    %c0_6 = arith.constant 0 : index
    %10 = vector.load %arg6[%c0_5, %c0_6] : memref<16x32xf32, #tpu.memory_space<vmem>>, vector<16x32xf32>
    %11 = arith.addf %9, %10 : vector<16x32xf32>
    %c0_7 = arith.constant 0 : index
    %c0_8 = arith.constant 0 : index
    %12 = vector.load %arg7[%c0_7, %c0_8] : memref<1x32xf32, #tpu.memory_space<vmem>>, vector<1x32xf32>
    %c0_9 = arith.constant 0 : index
    %c0_10 = arith.constant 0 : index
    %13 = vector.load %arg8[%c0_9, %c0_10] : memref<1x32xf32, #tpu.memory_space<vmem>>, vector<1x32xf32>
    %cst_11 = arith.constant dense<0.000000e+00> : vector<16xf32>
    %14 = vector.multi_reduction <add>, %11, %cst_11 [1] : vector<16x32xf32> to vector<16xf32>
    %15 = vector.shape_cast %14 : vector<16xf32> to vector<16x1xf32>
    %cst_12 = arith.constant 3.200000e+01 : f32
    %16 = vector.broadcast %cst_12 : f32 to vector<16x1xf32>
    %17 = arith.divf %15, %16 : vector<16x1xf32>
    %18 = vector.broadcast %17 : vector<16x1xf32> to vector<16x32xf32>
    %19 = arith.subf %11, %18 : vector<16x32xf32>
    %20 = vector.broadcast %17 : vector<16x1xf32> to vector<16x32xf32>
    %21 = arith.subf %11, %20 : vector<16x32xf32>
    %22 = arith.mulf %19, %21 : vector<16x32xf32>
    %cst_13 = arith.constant dense<0.000000e+00> : vector<16xf32>
    %23 = vector.multi_reduction <add>, %22, %cst_13 [1] : vector<16x32xf32> to vector<16xf32>
    %24 = vector.shape_cast %23 : vector<16xf32> to vector<16x1xf32>
    %cst_14 = arith.constant 3.200000e+01 : f32
    %25 = vector.broadcast %cst_14 : f32 to vector<16x1xf32>
    %26 = arith.divf %24, %25 : vector<16x1xf32>
    %27 = vector.broadcast %17 : vector<16x1xf32> to vector<16x32xf32>
    %28 = arith.subf %11, %27 : vector<16x32xf32>
    %cst_15 = arith.constant 9.99999996E-13 : f32
    %29 = vector.broadcast %cst_15 : f32 to vector<16x1xf32>
    %30 = arith.addf %26, %29 : vector<16x1xf32>
    %31 = math.rsqrt %30 : vector<16x1xf32>
    %32 = vector.broadcast %31 : vector<16x1xf32> to vector<16x32xf32>
    %33 = arith.mulf %28, %32 : vector<16x32xf32>
    %34 = vector.broadcast %12 : vector<1x32xf32> to vector<16x32xf32>
    %35 = arith.mulf %33, %34 : vector<16x32xf32>
    %36 = vector.broadcast %13 : vector<1x32xf32> to vector<16x32xf32>
    %37 = arith.addf %35, %36 : vector<16x32xf32>
    %c0_16 = arith.constant 0 : index
    %c0_17 = arith.constant 0 : index
    %38 = vector.load %arg1[%c0_16, %c0_17] : memref<1x16xf32, #tpu.memory_space<vmem>>, vector<1x16xf32>
    %39 = arith.truncf %38 : vector<1x16xf32> to vector<1x16xbf16>
    %c0_18 = arith.constant 0 : index
    %c0_19 = arith.constant 0 : index
    %40 = vector.load %arg2[%c0_18, %c0_19] : memref<16x32xbf16, #tpu.memory_space<vmem>>, vector<16x32xbf16>
    %cst_20 = arith.constant dense<0.000000e+00> : vector<1x32xf32>
    %41 = tpu.matmul %39, %40, %cst_20 {dimension_numbers = #tpu.dot_dimension_numbers<[1], [0], [0], [1], [0, 0, 1, 1], [], []>} : vector<1x16xbf16>, vector<16x32xbf16>, vector<1x32xf32> -> vector<1x32xf32>
    %c0_21 = arith.constant 0 : index
    %c0_22 = arith.constant 0 : index
    %42 = vector.load %arg3[%c0_21, %c0_22] : memref<32x32xf32, #tpu.memory_space<vmem>>, vector<32x32xf32>
    %cst_23 = arith.constant 1.000000e+00 : f32
    %43 = vector.broadcast %cst_23 : f32 to vector<1x32xf32>
    %44 = arith.subf %41, %43 : vector<1x32xf32>
    %cst_24 = arith.constant 1.000000e+09 : f32
    %45 = vector.broadcast %cst_24 : f32 to vector<1x32xf32>
    %46 = arith.mulf %44, %45 : vector<1x32xf32>
    %47 = vector.broadcast %46 : vector<1x32xf32> to vector<32x32xf32>
    %48 = arith.addf %42, %47 : vector<32x32xf32>
    %c0_25 = arith.constant 0 : index
    %c0_26 = arith.constant 0 : index
    %c0_27 = arith.constant 0 : index
    %49 = vector.load %arg9[%c0_25, %c0_26, %c0_27] : memref<2x32x128xbf16, #tpu.memory_space<vmem>>, vector<1x32x128xbf16>
    %50 = vector.shape_cast %49 : vector<1x32x128xbf16> to vector<32x128xbf16>
    %51 = arith.truncf %37 : vector<16x32xf32> to vector<16x32xbf16>
    %cst_28 = arith.constant dense<0.000000e+00> : vector<16x128xf32>
    %52 = tpu.matmul %51, %50, %cst_28 {dimension_numbers = #tpu.dot_dimension_numbers<[1], [0], [0], [1], [0, 0, 1, 1], [], []>} : vector<16x32xbf16>, vector<32x128xbf16>, vector<16x128xf32> -> vector<16x128xf32>
    %c0_29 = arith.constant 0 : index
    %c0_30 = arith.constant 0 : index
    %c0_31 = arith.constant 0 : index
    %53 = vector.load %arg10[%c0_29, %c0_30, %c0_31] : memref<2x1x128xf32, #tpu.memory_space<vmem>>, vector<1x1x128xf32>
    %54 = vector.shape_cast %53 : vector<1x1x128xf32> to vector<1x128xf32>
    %55 = vector.broadcast %54 : vector<1x128xf32> to vector<16x128xf32>
    %56 = arith.addf %52, %55 : vector<16x128xf32>
    %57 = vector.extract_strided_slice %56 {offsets = [0, 0], sizes = [16, 64], strides = [1, 1]} : vector<16x128xf32> to vector<16x64xf32>
    %58 = vector.extract_strided_slice %56 {offsets = [0, 64], sizes = [16, 64], strides = [1, 1]} : vector<16x128xf32> to vector<16x64xf32>
    %59 = tpu.concatenate %57, %58 in 0 : vector<16x64xf32>, vector<16x64xf32> -> vector<32x64xf32>
    %60 = vector.extract_strided_slice %59 {offsets = [0, 0], sizes = [32, 16], strides = [1, 1]} : vector<32x64xf32> to vector<32x16xf32>
    %61 = vector.extract_strided_slice %59 {offsets = [0, 16], sizes = [32, 16], strides = [1, 1]} : vector<32x64xf32> to vector<32x16xf32>
    %62 = vector.extract_strided_slice %59 {offsets = [0, 32], sizes = [32, 32], strides = [1, 1]} : vector<32x64xf32> to vector<32x32xf32>
    %63 = arith.truncf %60 : vector<32x16xf32> to vector<32x16xbf16>
    %64 = arith.truncf %61 : vector<32x16xf32> to vector<32x16xbf16>
    "tpu.trace_start"() <{level = 10 : i32, message = "qd,kd->qk"}> : () -> ()
    %cst_32 = arith.constant dense<0.000000e+00> : vector<32x32xf32>
    %65 = tpu.matmul %63, %64, %cst_32 {dimension_numbers = #tpu.dot_dimension_numbers<[1], [1], [0], [0], [0, 0, 1, 0], [], []>} : vector<32x16xbf16>, vector<32x16xbf16>, vector<32x32xf32> -> vector<32x32xf32>
    "tpu.trace_stop"() : () -> ()
    %66 = arith.addf %65, %48 : vector<32x32xf32>
    %cst_33 = arith.constant dense<0xFF800000> : vector<32xf32>
    %67 = vector.multi_reduction <maximumf>, %66, %cst_33 [1] : vector<32x32xf32> to vector<32xf32>
    %68 = vector.shape_cast %67 : vector<32xf32> to vector<32x1xf32>
    %69 = vector.broadcast %68 : vector<32x1xf32> to vector<32x32xf32>
    %70 = arith.subf %66, %69 : vector<32x32xf32>
    %71 = math.exp %70 : vector<32x32xf32>
    %cst_34 = arith.constant dense<0.000000e+00> : vector<32xf32>
    %72 = vector.multi_reduction <add>, %71, %cst_34 [1] : vector<32x32xf32> to vector<32xf32>
    %73 = vector.shape_cast %72 : vector<32xf32> to vector<32x1xf32>
    %74 = tpu.reciprocal %73 {approx = true} : vector<32x1xf32> -> vector<32x1xf32>
    %75 = vector.broadcast %74 : vector<32x1xf32> to vector<32x32xf32>
    %76 = arith.mulf %71, %75 : vector<32x32xf32>
    %77 = arith.truncf %76 : vector<32x32xf32> to vector<32x32xbf16>
    %78 = arith.truncf %62 : vector<32x32xf32> to vector<32x32xbf16>
    %cst_35 = arith.constant dense<0.000000e+00> : vector<32x32xf32>
    %79 = tpu.matmul %77, %78, %cst_35 {dimension_numbers = #tpu.dot_dimension_numbers<[1], [0], [0], [1], [0, 0, 1, 1], [], []>} : vector<32x32xbf16>, vector<32x32xbf16>, vector<32x32xf32> -> vector<32x32xf32>
    %80 = vector.extract_strided_slice %79 {offsets = [0, 0], sizes = [16, 32], strides = [1, 1]} : vector<32x32xf32> to vector<16x32xf32>
    %81 = vector.extract_strided_slice %79 {offsets = [16, 0], sizes = [16, 32], strides = [1, 1]} : vector<32x32xf32> to vector<16x32xf32>
    %82 = arith.addf %80, %81 : vector<16x32xf32>
    %c0_36 = arith.constant 0 : index
    %c0_37 = arith.constant 0 : index
    %c0_38 = arith.constant 0 : index
    %83 = vector.load %arg11[%c0_36, %c0_37, %c0_38] : memref<2x1x32xf32, #tpu.memory_space<vmem>>, vector<1x1x32xf32>
    %84 = vector.shape_cast %83 : vector<1x1x32xf32> to vector<1x32xf32>
    %85 = vector.broadcast %84 : vector<1x32xf32> to vector<16x32xf32>
    %86 = arith.addf %82, %85 : vector<16x32xf32>
    %87 = arith.addf %86, %37 : vector<16x32xf32>
    %c0_39 = arith.constant 0 : index
    %c0_40 = arith.constant 0 : index
    %c0_41 = arith.constant 0 : index
    %88 = vector.load %arg12[%c0_39, %c0_40, %c0_41] : memref<2x1x32xf32, #tpu.memory_space<vmem>>, vector<1x1x32xf32>
    %89 = vector.shape_cast %88 : vector<1x1x32xf32> to vector<1x32xf32>
    %c0_42 = arith.constant 0 : index
    %c0_43 = arith.constant 0 : index
    %c0_44 = arith.constant 0 : index
    %90 = vector.load %arg13[%c0_42, %c0_43, %c0_44] : memref<2x1x32xf32, #tpu.memory_space<vmem>>, vector<1x1x32xf32>
    %91 = vector.shape_cast %90 : vector<1x1x32xf32> to vector<1x32xf32>
    %cst_45 = arith.constant dense<0.000000e+00> : vector<16xf32>
    %92 = vector.multi_reduction <add>, %87, %cst_45 [1] : vector<16x32xf32> to vector<16xf32>
    %93 = vector.shape_cast %92 : vector<16xf32> to vector<16x1xf32>
    %cst_46 = arith.constant 3.200000e+01 : f32
    %94 = vector.broadcast %cst_46 : f32 to vector<16x1xf32>
    %95 = arith.divf %93, %94 : vector<16x1xf32>
    %96 = vector.broadcast %95 : vector<16x1xf32> to vector<16x32xf32>
    %97 = arith.subf %87, %96 : vector<16x32xf32>
    %98 = vector.broadcast %95 : vector<16x1xf32> to vector<16x32xf32>
    %99 = arith.subf %87, %98 : vector<16x32xf32>
    %100 = arith.mulf %97, %99 : vector<16x32xf32>
    %cst_47 = arith.constant dense<0.000000e+00> : vector<16xf32>
    %101 = vector.multi_reduction <add>, %100, %cst_47 [1] : vector<16x32xf32> to vector<16xf32>
    %102 = vector.shape_cast %101 : vector<16xf32> to vector<16x1xf32>
    %cst_48 = arith.constant 3.200000e+01 : f32
    %103 = vector.broadcast %cst_48 : f32 to vector<16x1xf32>
    %104 = arith.divf %102, %103 : vector<16x1xf32>
    %105 = vector.broadcast %95 : vector<16x1xf32> to vector<16x32xf32>
    %106 = arith.subf %87, %105 : vector<16x32xf32>
    %cst_49 = arith.constant 9.99999996E-13 : f32
    %107 = vector.broadcast %cst_49 : f32 to vector<16x1xf32>
    %108 = arith.addf %104, %107 : vector<16x1xf32>
    %109 = math.rsqrt %108 : vector<16x1xf32>
    %110 = vector.broadcast %109 : vector<16x1xf32> to vector<16x32xf32>
    %111 = arith.mulf %106, %110 : vector<16x32xf32>
    %112 = vector.broadcast %89 : vector<1x32xf32> to vector<16x32xf32>
    %113 = arith.mulf %111, %112 : vector<16x32xf32>
    %114 = vector.broadcast %91 : vector<1x32xf32> to vector<16x32xf32>
    %115 = arith.addf %113, %114 : vector<16x32xf32>
    %c0_50 = arith.constant 0 : index
    %c0_51 = arith.constant 0 : index
    %c0_52 = arith.constant 0 : index
    %116 = vector.load %arg14[%c0_50, %c0_51, %c0_52] : memref<2x32x64xbf16, #tpu.memory_space<vmem>>, vector<1x32x64xbf16>
    %117 = vector.shape_cast %116 : vector<1x32x64xbf16> to vector<32x64xbf16>
    %118 = arith.truncf %115 : vector<16x32xf32> to vector<16x32xbf16>
    %cst_53 = arith.constant dense<0.000000e+00> : vector<16x64xf32>
    %119 = tpu.matmul %118, %117, %cst_53 {dimension_numbers = #tpu.dot_dimension_numbers<[1], [0], [0], [1], [0, 0, 1, 1], [], []>} : vector<16x32xbf16>, vector<32x64xbf16>, vector<16x64xf32> -> vector<16x64xf32>
    %c0_54 = arith.constant 0 : index
    %c0_55 = arith.constant 0 : index
    %c0_56 = arith.constant 0 : index
    %120 = vector.load %arg15[%c0_54, %c0_55, %c0_56] : memref<2x1x64xf32, #tpu.memory_space<vmem>>, vector<1x1x64xf32>
    %121 = vector.shape_cast %120 : vector<1x1x64xf32> to vector<1x64xf32>
    %122 = vector.broadcast %121 : vector<1x64xf32> to vector<16x64xf32>
    %123 = arith.addf %119, %122 : vector<16x64xf32>
    %cst_57 = arith.constant 5.000000e-01 : f32
    %124 = vector.broadcast %cst_57 : f32 to vector<16x64xf32>
    %125 = arith.mulf %124, %123 : vector<16x64xf32>
    %cst_58 = arith.constant 4.471500e-02 : f32
    %126 = vector.broadcast %cst_58 : f32 to vector<16x64xf32>
    %127 = arith.mulf %126, %123 : vector<16x64xf32>
    %128 = arith.mulf %127, %123 : vector<16x64xf32>
    %129 = arith.mulf %128, %123 : vector<16x64xf32>
    %130 = arith.addf %123, %129 : vector<16x64xf32>
    %cst_59 = arith.constant 0.797884583 : f32
    %131 = vector.broadcast %cst_59 : f32 to vector<16x64xf32>
    %132 = arith.mulf %131, %130 : vector<16x64xf32>
    %133 = math.tanh %132 : vector<16x64xf32>
    %cst_60 = arith.constant 1.000000e+00 : f32
    %134 = vector.broadcast %cst_60 : f32 to vector<16x64xf32>
    %135 = arith.addf %134, %133 : vector<16x64xf32>
    %136 = arith.mulf %125, %135 : vector<16x64xf32>
    %c0_61 = arith.constant 0 : index
    %c0_62 = arith.constant 0 : index
    %c0_63 = arith.constant 0 : index
    %137 = vector.load %arg16[%c0_61, %c0_62, %c0_63] : memref<2x64x32xbf16, #tpu.memory_space<vmem>>, vector<1x64x32xbf16>
    %138 = vector.shape_cast %137 : vector<1x64x32xbf16> to vector<64x32xbf16>
    %139 = arith.truncf %136 : vector<16x64xf32> to vector<16x64xbf16>
    %cst_64 = arith.constant dense<0.000000e+00> : vector<16x32xf32>
    %140 = tpu.matmul %139, %138, %cst_64 {dimension_numbers = #tpu.dot_dimension_numbers<[1], [0], [0], [1], [0, 0, 1, 1], [], []>} : vector<16x64xbf16>, vector<64x32xbf16>, vector<16x32xf32> -> vector<16x32xf32>
    %c0_65 = arith.constant 0 : index
    %c0_66 = arith.constant 0 : index
    %c0_67 = arith.constant 0 : index
    %141 = vector.load %arg17[%c0_65, %c0_66, %c0_67] : memref<2x1x32xf32, #tpu.memory_space<vmem>>, vector<1x1x32xf32>
    %142 = vector.shape_cast %141 : vector<1x1x32xf32> to vector<1x32xf32>
    %143 = vector.broadcast %142 : vector<1x32xf32> to vector<16x32xf32>
    %144 = arith.addf %140, %143 : vector<16x32xf32>
    %145 = arith.addf %144, %115 : vector<16x32xf32>
    %c0_68 = arith.constant 0 : index
    %c0_69 = arith.constant 0 : index
    %c0_70 = arith.constant 0 : index
    %146 = vector.load %arg18[%c0_68, %c0_69, %c0_70] : memref<2x1x32xf32, #tpu.memory_space<vmem>>, vector<1x1x32xf32>
    %147 = vector.shape_cast %146 : vector<1x1x32xf32> to vector<1x32xf32>
    %c0_71 = arith.constant 0 : index
    %c0_72 = arith.constant 0 : index
    %c0_73 = arith.constant 0 : index
    %148 = vector.load %arg19[%c0_71, %c0_72, %c0_73] : memref<2x1x32xf32, #tpu.memory_space<vmem>>, vector<1x1x32xf32>
    %149 = vector.shape_cast %148 : vector<1x1x32xf32> to vector<1x32xf32>
    %cst_74 = arith.constant dense<0.000000e+00> : vector<16xf32>
    %150 = vector.multi_reduction <add>, %145, %cst_74 [1] : vector<16x32xf32> to vector<16xf32>
    %151 = vector.shape_cast %150 : vector<16xf32> to vector<16x1xf32>
    %cst_75 = arith.constant 3.200000e+01 : f32
    %152 = vector.broadcast %cst_75 : f32 to vector<16x1xf32>
    %153 = arith.divf %151, %152 : vector<16x1xf32>
    %154 = vector.broadcast %153 : vector<16x1xf32> to vector<16x32xf32>
    %155 = arith.subf %145, %154 : vector<16x32xf32>
    %156 = vector.broadcast %153 : vector<16x1xf32> to vector<16x32xf32>
    %157 = arith.subf %145, %156 : vector<16x32xf32>
    %158 = arith.mulf %155, %157 : vector<16x32xf32>
    %cst_76 = arith.constant dense<0.000000e+00> : vector<16xf32>
    %159 = vector.multi_reduction <add>, %158, %cst_76 [1] : vector<16x32xf32> to vector<16xf32>
    %160 = vector.shape_cast %159 : vector<16xf32> to vector<16x1xf32>
    %cst_77 = arith.constant 3.200000e+01 : f32
    %161 = vector.broadcast %cst_77 : f32 to vector<16x1xf32>
    %162 = arith.divf %160, %161 : vector<16x1xf32>
    %163 = vector.broadcast %153 : vector<16x1xf32> to vector<16x32xf32>
    %164 = arith.subf %145, %163 : vector<16x32xf32>
    %cst_78 = arith.constant 9.99999996E-13 : f32
    %165 = vector.broadcast %cst_78 : f32 to vector<16x1xf32>
    %166 = arith.addf %162, %165 : vector<16x1xf32>
    %167 = math.rsqrt %166 : vector<16x1xf32>
    %168 = vector.broadcast %167 : vector<16x1xf32> to vector<16x32xf32>
    %169 = arith.mulf %164, %168 : vector<16x32xf32>
    %170 = vector.broadcast %147 : vector<1x32xf32> to vector<16x32xf32>
    %171 = arith.mulf %169, %170 : vector<16x32xf32>
    %172 = vector.broadcast %149 : vector<1x32xf32> to vector<16x32xf32>
    %173 = arith.addf %171, %172 : vector<16x32xf32>
    %c1 = arith.constant 1 : index
    %c0_79 = arith.constant 0 : index
    %c0_80 = arith.constant 0 : index
    %174 = vector.load %arg9[%c1, %c0_79, %c0_80] : memref<2x32x128xbf16, #tpu.memory_space<vmem>>, vector<1x32x128xbf16>
    %175 = vector.shape_cast %174 : vector<1x32x128xbf16> to vector<32x128xbf16>
    %176 = arith.truncf %173 : vector<16x32xf32> to vector<16x32xbf16>
    %cst_81 = arith.constant dense<0.000000e+00> : vector<16x128xf32>
    %177 = tpu.matmul %176, %175, %cst_81 {dimension_numbers = #tpu.dot_dimension_numbers<[1], [0], [0], [1], [0, 0, 1, 1], [], []>} : vector<16x32xbf16>, vector<32x128xbf16>, vector<16x128xf32> -> vector<16x128xf32>
    %c1_82 = arith.constant 1 : index
    %c0_83 = arith.constant 0 : index
    %c0_84 = arith.constant 0 : index
    %178 = vector.load %arg10[%c1_82, %c0_83, %c0_84] : memref<2x1x128xf32, #tpu.memory_space<vmem>>, vector<1x1x128xf32>
    %179 = vector.shape_cast %178 : vector<1x1x128xf32> to vector<1x128xf32>
    %180 = vector.broadcast %179 : vector<1x128xf32> to vector<16x128xf32>
    %181 = arith.addf %177, %180 : vector<16x128xf32>
    %182 = vector.extract_strided_slice %181 {offsets = [0, 0], sizes = [16, 64], strides = [1, 1]} : vector<16x128xf32> to vector<16x64xf32>
    %183 = vector.extract_strided_slice %181 {offsets = [0, 64], sizes = [16, 64], strides = [1, 1]} : vector<16x128xf32> to vector<16x64xf32>
    %184 = tpu.concatenate %182, %183 in 0 : vector<16x64xf32>, vector<16x64xf32> -> vector<32x64xf32>
    %185 = vector.extract_strided_slice %184 {offsets = [0, 0], sizes = [32, 16], strides = [1, 1]} : vector<32x64xf32> to vector<32x16xf32>
    %186 = vector.extract_strided_slice %184 {offsets = [0, 16], sizes = [32, 16], strides = [1, 1]} : vector<32x64xf32> to vector<32x16xf32>
    %187 = vector.extract_strided_slice %184 {offsets = [0, 32], sizes = [32, 32], strides = [1, 1]} : vector<32x64xf32> to vector<32x32xf32>
    %188 = arith.truncf %185 : vector<32x16xf32> to vector<32x16xbf16>
    %189 = arith.truncf %186 : vector<32x16xf32> to vector<32x16xbf16>
    "tpu.trace_start"() <{level = 10 : i32, message = "qd,kd->qk"}> : () -> ()
    %cst_85 = arith.constant dense<0.000000e+00> : vector<32x32xf32>
    %190 = tpu.matmul %188, %189, %cst_85 {dimension_numbers = #tpu.dot_dimension_numbers<[1], [1], [0], [0], [0, 0, 1, 0], [], []>} : vector<32x16xbf16>, vector<32x16xbf16>, vector<32x32xf32> -> vector<32x32xf32>
    "tpu.trace_stop"() : () -> ()
    %191 = arith.addf %190, %48 : vector<32x32xf32>
    %cst_86 = arith.constant dense<0xFF800000> : vector<32xf32>
    %192 = vector.multi_reduction <maximumf>, %191, %cst_86 [1] : vector<32x32xf32> to vector<32xf32>
    %193 = vector.shape_cast %192 : vector<32xf32> to vector<32x1xf32>
    %194 = vector.broadcast %193 : vector<32x1xf32> to vector<32x32xf32>
    %195 = arith.subf %191, %194 : vector<32x32xf32>
    %196 = math.exp %195 : vector<32x32xf32>
    %cst_87 = arith.constant dense<0.000000e+00> : vector<32xf32>
    %197 = vector.multi_reduction <add>, %196, %cst_87 [1] : vector<32x32xf32> to vector<32xf32>
    %198 = vector.shape_cast %197 : vector<32xf32> to vector<32x1xf32>
    %199 = tpu.reciprocal %198 {approx = true} : vector<32x1xf32> -> vector<32x1xf32>
    %200 = vector.broadcast %199 : vector<32x1xf32> to vector<32x32xf32>
    %201 = arith.mulf %196, %200 : vector<32x32xf32>
    %202 = arith.truncf %201 : vector<32x32xf32> to vector<32x32xbf16>
    %203 = arith.truncf %187 : vector<32x32xf32> to vector<32x32xbf16>
    %cst_88 = arith.constant dense<0.000000e+00> : vector<32x32xf32>
    %204 = tpu.matmul %202, %203, %cst_88 {dimension_numbers = #tpu.dot_dimension_numbers<[1], [0], [0], [1], [0, 0, 1, 1], [], []>} : vector<32x32xbf16>, vector<32x32xbf16>, vector<32x32xf32> -> vector<32x32xf32>
    %205 = vector.extract_strided_slice %204 {offsets = [0, 0], sizes = [16, 32], strides = [1, 1]} : vector<32x32xf32> to vector<16x32xf32>
    %206 = vector.extract_strided_slice %204 {offsets = [16, 0], sizes = [16, 32], strides = [1, 1]} : vector<32x32xf32> to vector<16x32xf32>
    %207 = arith.addf %205, %206 : vector<16x32xf32>
    %c1_89 = arith.constant 1 : index
    %c0_90 = arith.constant 0 : index
    %c0_91 = arith.constant 0 : index
    %208 = vector.load %arg11[%c1_89, %c0_90, %c0_91] : memref<2x1x32xf32, #tpu.memory_space<vmem>>, vector<1x1x32xf32>
    %209 = vector.shape_cast %208 : vector<1x1x32xf32> to vector<1x32xf32>
    %210 = vector.broadcast %209 : vector<1x32xf32> to vector<16x32xf32>
    %211 = arith.addf %207, %210 : vector<16x32xf32>
    %212 = arith.addf %211, %173 : vector<16x32xf32>
    %c1_92 = arith.constant 1 : index
    %c0_93 = arith.constant 0 : index
    %c0_94 = arith.constant 0 : index
    %213 = vector.load %arg12[%c1_92, %c0_93, %c0_94] : memref<2x1x32xf32, #tpu.memory_space<vmem>>, vector<1x1x32xf32>
    %214 = vector.shape_cast %213 : vector<1x1x32xf32> to vector<1x32xf32>
    %c1_95 = arith.constant 1 : index
    %c0_96 = arith.constant 0 : index
    %c0_97 = arith.constant 0 : index
    %215 = vector.load %arg13[%c1_95, %c0_96, %c0_97] : memref<2x1x32xf32, #tpu.memory_space<vmem>>, vector<1x1x32xf32>
    %216 = vector.shape_cast %215 : vector<1x1x32xf32> to vector<1x32xf32>
    %cst_98 = arith.constant dense<0.000000e+00> : vector<16xf32>
    %217 = vector.multi_reduction <add>, %212, %cst_98 [1] : vector<16x32xf32> to vector<16xf32>
    %218 = vector.shape_cast %217 : vector<16xf32> to vector<16x1xf32>
    %cst_99 = arith.constant 3.200000e+01 : f32
    %219 = vector.broadcast %cst_99 : f32 to vector<16x1xf32>
    %220 = arith.divf %218, %219 : vector<16x1xf32>
    %221 = vector.broadcast %220 : vector<16x1xf32> to vector<16x32xf32>
    %222 = arith.subf %212, %221 : vector<16x32xf32>
    %223 = vector.broadcast %220 : vector<16x1xf32> to vector<16x32xf32>
    %224 = arith.subf %212, %223 : vector<16x32xf32>
    %225 = arith.mulf %222, %224 : vector<16x32xf32>
    %cst_100 = arith.constant dense<0.000000e+00> : vector<16xf32>
    %226 = vector.multi_reduction <add>, %225, %cst_100 [1] : vector<16x32xf32> to vector<16xf32>
    %227 = vector.shape_cast %226 : vector<16xf32> to vector<16x1xf32>
    %cst_101 = arith.constant 3.200000e+01 : f32
    %228 = vector.broadcast %cst_101 : f32 to vector<16x1xf32>
    %229 = arith.divf %227, %228 : vector<16x1xf32>
    %230 = vector.broadcast %220 : vector<16x1xf32> to vector<16x32xf32>
    %231 = arith.subf %212, %230 : vector<16x32xf32>
    %cst_102 = arith.constant 9.99999996E-13 : f32
    %232 = vector.broadcast %cst_102 : f32 to vector<16x1xf32>
    %233 = arith.addf %229, %232 : vector<16x1xf32>
    %234 = math.rsqrt %233 : vector<16x1xf32>
    %235 = vector.broadcast %234 : vector<16x1xf32> to vector<16x32xf32>
    %236 = arith.mulf %231, %235 : vector<16x32xf32>
    %237 = vector.broadcast %214 : vector<1x32xf32> to vector<16x32xf32>
    %238 = arith.mulf %236, %237 : vector<16x32xf32>
    %239 = vector.broadcast %216 : vector<1x32xf32> to vector<16x32xf32>
    %240 = arith.addf %238, %239 : vector<16x32xf32>
    %c1_103 = arith.constant 1 : index
    %c0_104 = arith.constant 0 : index
    %c0_105 = arith.constant 0 : index
    %241 = vector.load %arg14[%c1_103, %c0_104, %c0_105] : memref<2x32x64xbf16, #tpu.memory_space<vmem>>, vector<1x32x64xbf16>
    %242 = vector.shape_cast %241 : vector<1x32x64xbf16> to vector<32x64xbf16>
    %243 = arith.truncf %240 : vector<16x32xf32> to vector<16x32xbf16>
    %cst_106 = arith.constant dense<0.000000e+00> : vector<16x64xf32>
    %244 = tpu.matmul %243, %242, %cst_106 {dimension_numbers = #tpu.dot_dimension_numbers<[1], [0], [0], [1], [0, 0, 1, 1], [], []>} : vector<16x32xbf16>, vector<32x64xbf16>, vector<16x64xf32> -> vector<16x64xf32>
    %c1_107 = arith.constant 1 : index
    %c0_108 = arith.constant 0 : index
    %c0_109 = arith.constant 0 : index
    %245 = vector.load %arg15[%c1_107, %c0_108, %c0_109] : memref<2x1x64xf32, #tpu.memory_space<vmem>>, vector<1x1x64xf32>
    %246 = vector.shape_cast %245 : vector<1x1x64xf32> to vector<1x64xf32>
    %247 = vector.broadcast %246 : vector<1x64xf32> to vector<16x64xf32>
    %248 = arith.addf %244, %247 : vector<16x64xf32>
    %cst_110 = arith.constant 5.000000e-01 : f32
    %249 = vector.broadcast %cst_110 : f32 to vector<16x64xf32>
    %250 = arith.mulf %249, %248 : vector<16x64xf32>
    %cst_111 = arith.constant 4.471500e-02 : f32
    %251 = vector.broadcast %cst_111 : f32 to vector<16x64xf32>
    %252 = arith.mulf %251, %248 : vector<16x64xf32>
    %253 = arith.mulf %252, %248 : vector<16x64xf32>
    %254 = arith.mulf %253, %248 : vector<16x64xf32>
    %255 = arith.addf %248, %254 : vector<16x64xf32>
    %cst_112 = arith.constant 0.797884583 : f32
    %256 = vector.broadcast %cst_112 : f32 to vector<16x64xf32>
    %257 = arith.mulf %256, %255 : vector<16x64xf32>
    %258 = math.tanh %257 : vector<16x64xf32>
    %cst_113 = arith.constant 1.000000e+00 : f32
    %259 = vector.broadcast %cst_113 : f32 to vector<16x64xf32>
    %260 = arith.addf %259, %258 : vector<16x64xf32>
    %261 = arith.mulf %250, %260 : vector<16x64xf32>
    %c1_114 = arith.constant 1 : index
    %c0_115 = arith.constant 0 : index
    %c0_116 = arith.constant 0 : index
    %262 = vector.load %arg16[%c1_114, %c0_115, %c0_116] : memref<2x64x32xbf16, #tpu.memory_space<vmem>>, vector<1x64x32xbf16>
    %263 = vector.shape_cast %262 : vector<1x64x32xbf16> to vector<64x32xbf16>
    %264 = arith.truncf %261 : vector<16x64xf32> to vector<16x64xbf16>
    %cst_117 = arith.constant dense<0.000000e+00> : vector<16x32xf32>
    %265 = tpu.matmul %264, %263, %cst_117 {dimension_numbers = #tpu.dot_dimension_numbers<[1], [0], [0], [1], [0, 0, 1, 1], [], []>} : vector<16x64xbf16>, vector<64x32xbf16>, vector<16x32xf32> -> vector<16x32xf32>
    %c1_118 = arith.constant 1 : index
    %c0_119 = arith.constant 0 : index
    %c0_120 = arith.constant 0 : index
    %266 = vector.load %arg17[%c1_118, %c0_119, %c0_120] : memref<2x1x32xf32, #tpu.memory_space<vmem>>, vector<1x1x32xf32>
    %267 = vector.shape_cast %266 : vector<1x1x32xf32> to vector<1x32xf32>
    %268 = vector.broadcast %267 : vector<1x32xf32> to vector<16x32xf32>
    %269 = arith.addf %265, %268 : vector<16x32xf32>
    %270 = arith.addf %269, %240 : vector<16x32xf32>
    %c1_121 = arith.constant 1 : index
    %c0_122 = arith.constant 0 : index
    %c0_123 = arith.constant 0 : index
    %271 = vector.load %arg18[%c1_121, %c0_122, %c0_123] : memref<2x1x32xf32, #tpu.memory_space<vmem>>, vector<1x1x32xf32>
    %272 = vector.shape_cast %271 : vector<1x1x32xf32> to vector<1x32xf32>
    %c1_124 = arith.constant 1 : index
    %c0_125 = arith.constant 0 : index
    %c0_126 = arith.constant 0 : index
    %273 = vector.load %arg19[%c1_124, %c0_125, %c0_126] : memref<2x1x32xf32, #tpu.memory_space<vmem>>, vector<1x1x32xf32>
    %274 = vector.shape_cast %273 : vector<1x1x32xf32> to vector<1x32xf32>
    %cst_127 = arith.constant dense<0.000000e+00> : vector<16xf32>
    %275 = vector.multi_reduction <add>, %270, %cst_127 [1] : vector<16x32xf32> to vector<16xf32>
    %276 = vector.shape_cast %275 : vector<16xf32> to vector<16x1xf32>
    %cst_128 = arith.constant 3.200000e+01 : f32
    %277 = vector.broadcast %cst_128 : f32 to vector<16x1xf32>
    %278 = arith.divf %276, %277 : vector<16x1xf32>
    %279 = vector.broadcast %278 : vector<16x1xf32> to vector<16x32xf32>
    %280 = arith.subf %270, %279 : vector<16x32xf32>
    %281 = vector.broadcast %278 : vector<16x1xf32> to vector<16x32xf32>
    %282 = arith.subf %270, %281 : vector<16x32xf32>
    %283 = arith.mulf %280, %282 : vector<16x32xf32>
    %cst_129 = arith.constant dense<0.000000e+00> : vector<16xf32>
    %284 = vector.multi_reduction <add>, %283, %cst_129 [1] : vector<16x32xf32> to vector<16xf32>
    %285 = vector.shape_cast %284 : vector<16xf32> to vector<16x1xf32>
    %cst_130 = arith.constant 3.200000e+01 : f32
    %286 = vector.broadcast %cst_130 : f32 to vector<16x1xf32>
    %287 = arith.divf %285, %286 : vector<16x1xf32>
    %288 = vector.broadcast %278 : vector<16x1xf32> to vector<16x32xf32>
    %289 = arith.subf %270, %288 : vector<16x32xf32>
    %cst_131 = arith.constant 9.99999996E-13 : f32
    %290 = vector.broadcast %cst_131 : f32 to vector<16x1xf32>
    %291 = arith.addf %287, %290 : vector<16x1xf32>
    %292 = math.rsqrt %291 : vector<16x1xf32>
    %293 = vector.broadcast %292 : vector<16x1xf32> to vector<16x32xf32>
    %294 = arith.mulf %289, %293 : vector<16x32xf32>
    %295 = vector.broadcast %272 : vector<1x32xf32> to vector<16x32xf32>
    %296 = arith.mulf %294, %295 : vector<16x32xf32>
    %297 = vector.broadcast %274 : vector<1x32xf32> to vector<16x32xf32>
    %298 = arith.addf %296, %297 : vector<16x32xf32>
    %c0_132 = arith.constant 0 : index
    %c0_133 = arith.constant 0 : index
    %299 = vector.load %arg4[%c0_132, %c0_133] : memref<2x16xf32, #tpu.memory_space<vmem>>, vector<2x16xf32>
    %cst_134 = arith.constant dense<0.000000e+00> : vector<2x32xf32>
    %300 = tpu.matmul %299, %298, %cst_134 {dimension_numbers = #tpu.dot_dimension_numbers<[1], [0], [0], [1], [0, 0, 1, 1], [], []>} : vector<2x16xf32>, vector<16x32xf32>, vector<2x32xf32> -> vector<2x32xf32>
    %c0_135 = arith.constant 0 : index
    %c0_136 = arith.constant 0 : index
    %301 = vector.load %arg20[%c0_135, %c0_136] : memref<32x32xbf16, #tpu.memory_space<vmem>>, vector<32x32xbf16>
    %302 = arith.truncf %300 : vector<2x32xf32> to vector<2x32xbf16>
    %cst_137 = arith.constant dense<0.000000e+00> : vector<2x32xf32>
    %303 = tpu.matmul %302, %301, %cst_137 {dimension_numbers = #tpu.dot_dimension_numbers<[1], [0], [0], [1], [0, 0, 1, 1], [], []>} : vector<2x32xbf16>, vector<32x32xbf16>, vector<2x32xf32> -> vector<2x32xf32>
    %c0_138 = arith.constant 0 : index
    %c0_139 = arith.constant 0 : index
    %304 = vector.load %arg21[%c0_138, %c0_139] : memref<1x32xf32, #tpu.memory_space<vmem>>, vector<1x32xf32>
    %305 = vector.broadcast %304 : vector<1x32xf32> to vector<2x32xf32>
    %306 = arith.addf %303, %305 : vector<2x32xf32>
    %307 = math.tanh %306 : vector<2x32xf32>
    %c0_140 = arith.constant 0 : index
    %c0_141 = arith.constant 0 : index
    %308 = vector.load %arg22[%c0_140, %c0_141] : memref<1x32xf32, #tpu.memory_space<vmem>>, vector<1x32xf32>
    %309 = vector.broadcast %308 : vector<1x32xf32> to vector<2x32xf32>
    %310 = arith.mulf %307, %309 : vector<2x32xf32>
    %cst_142 = arith.constant dense<0.000000e+00> : vector<2xf32>
    %311 = vector.multi_reduction <add>, %310, %cst_142 [1] : vector<2x32xf32> to vector<2xf32>
    %312 = vector.shape_cast %311 : vector<2xf32> to vector<2x1xf32>
    %c0_143 = arith.constant 0 : index
    %c0_144 = arith.constant 0 : index
    %313 = vector.load %arg23[%c0_143, %c0_144] : memref<1x1xf32, #tpu.memory_space<vmem>>, vector<1x1xf32>
    %314 = vector.broadcast %313 : vector<1x1xf32> to vector<2x1xf32>
    %315 = arith.addf %312, %314 : vector<2x1xf32>
    %c0_145 = arith.constant 0 : index
    %c0_146 = arith.constant 0 : index
    %316 = vector.load %arg24[%c0_145, %c0_146] : memref<2x1xf32, #tpu.memory_space<vmem>>, vector<2x1xf32>
    tpu.vector_store %arg24[%c0_145, %c0_146], %315 {strides = array<i32>} : memref<2x1xf32, #tpu.memory_space<vmem>>, vector<2x1xf32>,
    return
  }
}

</mosaic_0001>

<bundles_post_ra>
// kernel: finbert_regressor_forward.1
= control target key start
LH: loop header
LB: loop body
LE: loop exit
PB: predicated region body
PF: predicated region fallthrough
CT: control target
= control target key end

     0   :  { %s2466_s0 = inlined_call_operand.vmem [shape: s32[16,1], index: 0, kind: input, shape index: {}]   ;;  %s2467_s1 = inlined_call_operand.vmem [shape: f32[1,16], index: 1, kind: input, shape index: {}]   ;;  %s2468_s2 = inlined_call_operand.vmem [shape: bf16[16,32], index: 2, kind: input, shape index: {}]   ;;  %s2469_s3 = inlined_call_operand.vmem [shape: f32[32,32], index: 3, kind: input, shape index: {}]   ;;  %s2470_s4 = inlined_call_operand.vmem [shape: f32[2,16], index: 4, kind: input, shape index: {}]   ;;  %s2471_s5 = inlined_call_operand.vmem [shape: bf16[100,32], index: 5, kind: input, shape index: {}]   ;;  %s2472_s6 = inlined_call_operand.vmem [shape: f32[16,32], index: 6, kind: input, shape index: {}]   ;;  %s2473_s7 = inlined_call_operand.hbm [shape: f32[1,32], index: 7, kind: input, shape index: {}]   ;;  %s2474_s8 = inlined_call_operand.hbm [shape: f32[1,32], index: 8, kind: input, shape index: {}]   ;;  %s2475_s9 = inlined_call_operand.vmem [shape: bf16[2,32,128], index: 9, kind: input, shape index: {}]   ;;  %s2476_s10 = inlined_call_operand.vmem [shape: f32[2,1,128], index: 10, kind: input, shape index: {}]   ;;  %s2477_s11 = inlined_call_operand.vmem [shape: f32[2,1,32], index: 11, kind: input, shape index: {}]   ;;  %s2478_s12 = inlined_call_operand.vmem [shape: f32[2,1,32], index: 12, kind: input, shape index: {}]   ;;  %s2479_s13 = inlined_call_operand.vmem [shape: f32[2,1,32], index: 13, kind: input, shape index: {}]   ;;  %s2480_s14 = inlined_call_operand.vmem [shape: bf16[2,32,64], index: 14, kind: input, shape index: {}]   ;;  %s2481_s15 = inlined_call_operand.vmem [shape: f32[2,1,64], index: 15, kind: input, shape index: {}]   ;;  %s2482_s16 = inlined_call_operand.vmem [shape: bf16[2,64,32], index: 16, kind: input, shape index: {}]   ;;  %s2483_s17 = inlined_call_operand.vmem [shape: f32[2,1,32], index: 17, kind: input, shape index: {}]   ;;  %s2484_s18 = inlined_call_operand.vmem [shape: f32[2,1,32], index: 18, kind: input, shape index: {}]   ;;  %s2485_s19 = inlined_call_operand.vmem [shape: f32[2,1,32], index: 19, kind: input, shape index: {}]   ;;  %s2486_s20 = inlined_call_operand.vmem [shape: bf16[32,32], index: 20, kind: input, shape index: {}]   ;;  %s2487_s21 = inlined_call_operand.vmem [shape: f32[1,32], index: 21, kind: input, shape index: {}]   ;;  %s2488_s22 = inlined_call_operand.vmem [shape: f32[1,32], index: 22, kind: input, shape index: {}]   ;;  %s2489_s23 = inlined_call_operand.<no memory space> [shape: f32[1,1], index: 23, kind: input, shape index: {}]   ;;  %s2490_s24 = inlined_call_operand.vmem [shape: f32[2,1], index: 24, kind: output, shape index: {}]  }
   0x1   :  { %2495 = sst [smem:[#allocation9_spill]] %s2466_s0  ;;  %v29_v0 = vstv %s2489_s23 }
   0x2   :  { %2496 = sst [smem:[#allocation10_spill]] %s2467_s1  ;;  %30 = vst [vmem:[#allocation2] sm:$0x1] %v29_v0 }
   0x3   :  { %2497 = sst [smem:[#allocation11_spill]] %s2468_s2 }
   0x4   :  { %2498 = sst [smem:[#allocation12_spill]] %s2469_s3 }
   0x5   :  { %2499 = sst [smem:[#allocation13_spill]] %s2470_s4 }
   0x6   :  { %2500 = sst [smem:[#allocation14_spill]] %s2471_s5 }
   0x7   :  { %2501 = sst [smem:[#allocation15_spill]] %s2472_s6 }
   0x8   :  { %2502 = sst [smem:[#allocation16_spill]] %s2473_s7 }
   0x9   :  { %2503 = sst [smem:[#allocation17_spill]] %s2474_s8 }
   0xa   :  { %31 = vsyncpa [#allocation4], 0 }
   0xb   :  { %32 = vsyncpa [#allocation6], 0  ;;  %s1994_s27 = smov [#allocation3]   ;;  %s1995_s6 = smov [#allocation5]  }
   0xc   :  { %s53_s28 = sshll.u32 %s1994_s27, 4  ;;  %s63_s2 = sshll.u32 %s1995_s6, 4  ;;  %s54_s28 = int_to_ptr.vmem [resolvable:$true] %s53_s28  ;;  %s64_s2 = int_to_ptr.vmem [resolvable:$true] %s63_s2 }
   0xd   :  { %s1958_s29 = scalar_lea.vmem %s54_s28, 16  ;;  %s1962_s0 = scalar_lea.vmem %s54_s28, 32 }
   0xe   :  { %p1959_p0 = scmp.ne.s32.totalorder %s54_s28, %s1958_s29  ;;  %p1963_p1 = scmp.lt.s32.totalorder %s54_s28, %s54_s28 }
   0xf   :  { %p1964_p2 = scmp.lt.s32.totalorder %s1962_s0, %s1958_s29 }
  0x11   :  { %p1965_p3 = por %p1964_p2, %p1963_p1 }
  0x13   :  { %p1966_p4 = pnand %p1965_p3, %p1959_p0 }
  0x15   :  { %1969 = shalt.err (!%p1966_p4)
}
  0x16   :  { %s2504_s23 = sld [smem:[#allocation16_spill]]  ;;  %s1978_s3 = scalar_lea.vmem %s64_s2, 16 }
  0x17   :  { %p1979_p5 = scmp.ne.s32.totalorder %s64_s2, %s1978_s3  ;;  %s1982_s25 = scalar_lea.vmem %s64_s2, 32 }
  0x18   :  { %p1983_p6 = scmp.lt.s32.totalorder %s64_s2, %s64_s2  ;;  %p1984_p7 = scmp.lt.s32.totalorder %s1982_s25, %s1978_s3 }
  0x1a   :  { %p1985_p8 = por %p1984_p7, %p1983_p6 }
  0x1c   :  { %56 = dma.hbm_to_vmem [thread:$0]  %s2504_s23, 16, %s54_s28, [#allocation4]  }
  0x1d   :  { %p1986_p9 = pnand %p1985_p8, %p1979_p5 }
  0x1f   :  { %1989 = shalt.err (!%p1986_p9)
}
  0x20   :  { %s2505_s1 = sld [smem:[#allocation17_spill]] }
  0x26   :  { %66 = dma.hbm_to_vmem [thread:$0]  %s2505_s1, 16, %s64_s2, [#allocation6]  }
  0x27   :  { %1990 = dma.done.wait [#allocation4], 16  }
  0x28   :  { %1991 = vsyncadd [#allocation4], 4294967280 }
  0x29   :  { %1992 = dma.done.wait [#allocation6], 16  }
  0x2a   :  { %1993 = vsyncadd [#allocation6], 4294967280  ;;  %v1996_v1 = vmov 0   ;;  %v1997_v2 = vmov 0.0   ;;  %s2506_s27 = sld [smem:[#allocation9_spill]]  ;;  %vm177_vm0 = vcmask 1041408   ;;  %v104_v13 = vlaneseq }
  0x2b   :  { %1851 = vset.pattern.permute.xlu0 %v1996_v1  ;;  %1712 = vmatprep.subr.bf16.mxu0 %v1997_v2  ;;  %s2507_s0 = sld [smem:[#allocation14_spill]]  ;;  %vm1998_vm1 = vmmov 0   ;;  %vm173_vm4 = vcmask 818176   ;;  %vm224_vm5 = vcmask 261120   ;;  %vm278_vm6 = vcmask 130048   ;;  %v1870_v43 = vld [vmem:[%s2475_s9 + $0x8] sm:$0xff]  }
  0x2c   :  { %1730 = vmatprep.subr.bf16.mxu1 %v1997_v2  ;;  %1726 = vmatprep.mubr.msk.bf16.mxu0 %vm1998_vm1, %v1997_v2  ;;  %v105_v14 = vand.u32 127, %v104_v13  ;;  %s2508_s29 = sld [smem:[#allocation15_spill]]  ;;  %v1871_v44 = vld [vmem:[%s2475_s9] sm:$0xff]   ;;  %s1999_s2 = smov 64   ;;  %vm771_vm7 = vcmask 523264   ;;  %vm1548_vm8 = vcmask 254976  }
  0x2d   :  { %1732 = vmatprep.mubr.msk.bf16.mxu1 %vm1998_vm1, %v1997_v2  ;;  %s2509_s3 = sld [smem:[#allocation11_spill]]  ;;  %v1576_v53 = vld [vmem:[#allocation3] ss:$0 sm:$0xff]  ;;  %v1577_v57 = vld [vmem:[#allocation5] ss:$0 sm:$0xff]  ;;  %s2001_s5 = smov 96  }
  0x2e   :  { %s2510_s4 = sld [smem:[#allocation10_spill]]  ;;  %vm1560_vm9 = vcmask 1024  }
  0x2f   :  { %s2511_s30 = sld [smem:[#allocation12_spill]] }
  0x30   :  { %v106_v3 = vld [vmem:[%s2506_s27] sm:$0xff]  ;;  %v107_v4 = vld [vmem:[%s2506_s27 + $0x8] sm:$0xff]  ;;  %s2512_s7 = sld [smem:[#allocation13_spill]] }
  0x31   :  { %109 = vperm.xlu0 %1851, %v106_v3   ;;  %v1862_v5 = vld [vmem:[%s2507_s0 + $0x30] ss:$0 sps:$4 sm:$0x33]   ;;  %v1863_v7 = vld [vmem:[%s2507_s0 + $0x28] sm:$0xff]   ;;  %v1864_v8 = vld [vmem:[%s2507_s0 + $0x20] sm:$0xff]  }
  0x32   :  { %v179_v6 = vsel %vm177_vm0, %v1862_v5, 0  ;;  %v1865_v9 = vld [vmem:[%s2507_s0 + $0x18] sm:$0xff]   ;;  %v1866_v10 = vld [vmem:[%s2507_s0 + $0x10] sm:$0xff]   ;;  %v1867_v11 = vld [vmem:[%s2507_s0 + $0x8] sm:$0xff]  }
  0x33   :  { %1713 = vmatpush3.bf16.msra.mxu0 %v179_v6  ;;  %v1868_v12 = vld [vmem:[%s2507_s0] sm:$0xff]   ;;  %v133_v24 = vld [vmem:[%s2508_s29 + $0x8] sm:$0xff] }
  0x34   :  { %1714 = vmatprep.subr.bf16.mxu0 %v1997_v2  ;;  %v132_v20 = vld [vmem:[%s2508_s29] sm:$0xff]  ;;  %s2000_s29 = smov 112  }
  0x35   :  { %112 = vperm.xlu0 %1851, %v107_v4   ;;  %v1869_v40 = vld [vmem:[%s2509_s3] sm:$0xff]  }
  0x36   :  { %1731 = vmatpush3.bf16.msra.mxu1 %v1869_v40  ;;  %v268_v41 = vld [vmem:[%s2510_s4] sm:$0x1] }
  0x37   :  { %1715 = vmatpush3.bf16.msra.mxu0 %v1863_v7  ;;  %v269_v42 = vpack.c.bf16 %v268_v41, %v268_v41  ;;  %1736 = vmatprep.subr.bf16.mxu1 %v1997_v2  ;;  %v1581_v4 = vld [vmem:[%s2476_s10] ss:$0 sm:$0xff] }
  0x38   :  { %1716 = vmatprep.subr.bf16.mxu0 %v1997_v2 }
  0x39   :  { %1733 = vmatmul.mubr.msk.bf16.vlgmr.msra.gmra.mxu1 %vm278_vm6, %v269_v42 }
  0x3a   :  { %1740 = vmatprep.mubr.msk.bf16.mxu1 %vm1998_vm1, %v1997_v2  ;;  %1737 = vmatpush3.bf16.msra.mxu1 %v1870_v43 }
  0x3b   :  { %1717 = vmatpush3.bf16.msra.mxu0 %v1864_v8  ;;  %1738 = vmatprep.subr.bf16.mxu1 %v1997_v2 }
  0x3c   :  { %1718 = vmatprep.subr.bf16.mxu0 %v1997_v2 }
  0x3e   :  { %1739 = vmatpush3.bf16.msra.mxu1 %v1871_v44 }
  0x3f   :  { %1719 = vmatpush3.bf16.msra.mxu0 %v1865_v9 }
  0x40   :  { %1720 = vmatprep.subr.bf16.mxu0 %v1997_v2 }
  0x43   :  { %1721 = vmatpush3.bf16.msra.mxu0 %v1866_v10 }
  0x44   :  { %1722 = vmatprep.subr.bf16.mxu0 %v1997_v2 }
  0x47   :  { %1723 = vmatpush3.bf16.msra.mxu0 %v1867_v11 }
  0x48   :  { %1724 = vmatprep.subr.bf16.mxu0 %v1997_v2 }
  0x4b   :  { %1725 = vmatpush3.bf16.msra.mxu0 %v1868_v12 }
  0xac   :  { %v110_v15 = vpop.permute.xlu0 %109 }
  0xad   :  { %vm114_vm2 = vcmp.eq.s32.totalorder %v105_v14, %v110_v15 }
  0xae   :  { %v116_v17 = vsel %vm114_vm2, 1.0, %v1997_v2 }
  0xb0   :  { %v113_v16 = vpop.permute.xlu0 %112 }
  0xb1   :  { %vm115_vm3 = vcmp.eq.s32.totalorder %v105_v14, %v113_v16 }
  0xb2   :  { %v117_v18 = vsel %vm115_vm3, 1.0, %v1997_v2 }
  0xb3   :  { %v118_v19 = vpack.c.bf16 %v117_v18, %v116_v17 }
  0xb5   :  { %1727 = vmatmul.mubr.msk.bf16.vlgmr.msra.gmra.mxu0 %vm173_vm4, %v118_v19 }
  0xf9   :  { %v316_v62 = vpop.f32.mrf.mxu1 }
  0xfb   :  { %v1734_v63 = vpop.f32.mrf.mxu1 }
  0xfd   :  { %v319_v0 = vpop.f32.mrf.mxu1 }
  0xff   :  { %v1735_v1 = vpop.f32.mrf.mxu1 }
 0x175   :  { %v215_v21 = vpop.f32.mrf.mxu0 }
 0x176   :  { %v216_v22 = vadd.f32 %v215_v21, %v132_v20  ;;  %v1580_v21 = vadd.f32 -1.0, %v316_v62 }
 0x177   :  { %v1728_v23 = vpop.f32.mrf.mxu0 }
 0x178   :  { %v225_v25 = vsel %vm224_vm5, %v216_v22, 0.0  ;;  %v327_v23 = vmul.f32 1e+09, %v1580_v21 }
 0x179   :  { %226 = vadd.xlane.f32.xlu1 %v225_v25  ;;  %v218_v26 = vpop.f32.mrf.mxu0 }
 0x17a   :  { %v219_v27 = vadd.f32 %v218_v26, %v133_v24  ;;  %v324_v26 = vld [vmem:[%s2511_s30 + $0x10] sm:$0xff] }
 0x17b   :  { %v1729_v28 = vpop.f32.mrf.mxu0 }
 0x17c   :  { %v228_v29 = vsel %vm224_vm5, %v219_v27, 0.0 }
 0x17d   :  { %229 = vadd.xlane.f32.xlu1 %v228_v29 }
 0x202   :  { %v227_v30 = vpop.xlane.xlu1 %226 }
 0x203   :  { %v232_v31 = vmul.f32 0.03125, %v227_v30 }
 0x205   :  { %v234_v32 = vsub.f32 %v216_v22, %v232_v31  ;;  %v329_v22 = vshrl.u32 %v104_v13, 7  ;;  %v323_v13 = vld [vmem:[%s2511_s30 + $0x8] sm:$0xff] }
 0x206   :  { %v230_v33 = vpop.xlane.xlu1 %229 }
 0x207   :  { %v233_v34 = vmul.f32 0.03125, %v230_v33  ;;  %v236_v35 = vmul.f32 %v234_v32, %v234_v32  ;;  %v330_v24 = vsub.s32 0, %v329_v22 }
 0x209   :  { %v235_v36 = vsub.f32 %v219_v27, %v233_v34  ;;  %v238_v37 = vsel %vm224_vm5, %v236_v35, 0.0  ;;  %v331_v25 = vrot.slane %v327_v23, %v330_v24  ;;  %v322_v27 = vld [vmem:[%s2511_s30] sm:$0xff]  ;;  %v325_v35 = vld [vmem:[%s2511_s30 + $0x18] sm:$0xff] }
 0x20a   :  { %239 = vadd.xlane.f32.xlu0 %v238_v37  ;;  %v1589_v23 = vld [vmem:[%s2477_s11] ss:$0 sm:$0xff] }
 0x20b   :  { %v237_v38 = vmul.f32 %v235_v36, %v235_v36  ;;  %v2238_v28 = vadd.f32 %v331_v25, %v324_v26  ;;  %v2241_v31 = vadd.f32 %v331_v25, %v322_v27  ;;  %v2251_v37 = vadd.f32 %v331_v25, %v323_v13 }
 0x20c   :  { %v2254_v40 = vadd.f32 %v331_v25, %v325_v35 }
 0x20d   :  { %v241_v39 = vsel %vm224_vm5, %v237_v38, 0.0 }
 0x20e   :  { %242 = vadd.xlane.f32.xlu1 %v241_v39 }
 0x293   :  { %v240_v45 = vpop.xlane.xlu0 %239 }
 0x294   :  { %v244_v46 = vmul.f32 0.03125, %v240_v45 }
 0x296   :  { %v246_v47 = vadd.f32 1e-12, %v244_v46 }
 0x297   :  { %v243_v48 = vpop.xlane.xlu1 %242 }
 0x298   :  { %1888 = vrsqrt.f32 %v246_v47  ;;  %v245_v49 = vmul.f32 0.03125, %v243_v48 }
 0x29a   :  { %v247_v50 = vadd.f32 1e-12, %v245_v49 }
 0x29c   :  { %1890 = vrsqrt.f32 %v247_v50 }
 0x2a5   :  { %v1889_v51 = vpop.eup %1888 }
 0x2a6   :  { %v250_v52 = vmul.f32 %v1889_v51, %v234_v32 }
 0x2a8   :  { %v258_v56 = vmul.f32 %v1576_v53, %v250_v52 }
 0x2a9   :  { %v1891_v54 = vpop.eup %1890 }
 0x2aa   :  { %v251_v55 = vmul.f32 %v1891_v54, %v235_v36  ;;  %v2205_v59 = vadd.f32 %v1577_v57, %v258_v56 }
 0x2ac   :  { %v259_v58 = vmul.f32 %v1576_v53, %v251_v55 }
 0x2ae   :  { %v2207_v60 = vadd.f32 %v1577_v57, %v259_v58 }
 0x2b0   :  { %v340_v61 = vpack.c.bf16 %v2207_v60, %v2205_v59 }
 0x2b2   :  { %1741 = vmatmul.mubr.msk.bf16.vlgmr.msra.gmra.mxu1 %vm224_vm5, %v340_v61 }
 0x372   :  { %v397_v3 = vpop.f32.mrf.mxu1 }
 0x373   :  { %v398_v7 = vadd.f32 %v1581_v4, %v397_v3 }
 0x374   :  { %v1742_v5 = vpop.f32.mrf.mxu1 }
 0x376   :  { %v400_v6 = vpop.f32.mrf.mxu1 }
 0x377   :  { %v401_v8 = vadd.f32 %v1581_v4, %v400_v6 }
 0x378   :  { %v1743_v9 = vpop.f32.mrf.mxu1 }
 0x379   :  { %v1852_v10 = vpack.i.bf16 %v401_v8, %v398_v7  ;;  %v412_v11 = vpack.c.bf16 %v401_v8, %v398_v7 }
 0x37b   :  { %1853 = vrot.lane.b32.xlu1 %v1852_v10, %s1999_s2  ;;  %1748 = vmatprep.mubr.msk.bf16.mxu1 %vm278_vm6, %v412_v11 }
 0x3ed   :  { %v1854_v12 = vpop.permute.xlu1 %1853 }
 0x3ee   :  { %v1856_v14 = vunpack.i.h.bf16 %v1854_v12  ;;  %v1855_v15 = vunpack.i.l.bf16 %v1854_v12 }
 0x3f0   :  { %v2217_v16 = vpack.c.bf16 %v1856_v14, %v1855_v15 }
 0x3f2   :  { %418 = vrot.lane.b32.xlu1 %v2217_v16, %s2000_s29 }
 0x3f6   :  { %416 = vrot.lane.b32.xlu1 %v412_v11, %s2000_s29 }
 0x464   :  { %v419_v17 = vpop.permute.xlu1 %418 }
 0x465   :  { %v430_v18 = vsel %vm278_vm6, %v419_v17, 0  ;;  %1839 = vmatprep.subr.msk.bf16.mxu1 %vm278_vm6, %v419_v17 }
 0x466   :  { %1745 = vmatpush3.bf16.xpose.msra.mxu1 %v430_v18 }
 0x468   :  { %v417_v19 = vpop.permute.xlu1 %416 }
 0x469   :  { %1840 = vmatprep.subr.msk.bf16.mxu1 %vm278_vm6, %v417_v19  ;;  %v427_v20 = vsel %vm278_vm6, %v417_v19, 0 }
 0x46e   :  { %1747 = vmatpush3.bf16.xpose.msra.mxu1 %v427_v20 }
 0x46f   :  { %1760 = vmatprep.subr.bf16.mxu1 %v1997_v2 }
 0x475   :  { %1749 = vmatmul.mubr.msk.bf16.vlgmr.msra.gmra.mxu1 %vm278_vm6, %v2217_v16 }
 0x476   :  { %1764 = vmatprep.mubr.msk.bf16.mxu1 %vm1998_vm1, %v1997_v2 }
 0x535   :  { %v1750_v29 = vpop.f32.mrf.mxu1 }
 0x536   :  { %v475_v30 = vadd.f32 %v1750_v29, %v2238_v28 }
 0x537   :  { %v466_v32 = vpop.f32.mrf.mxu1 }
 0x538   :  { %v467_v33 = vadd.f32 %v466_v32, %v2241_v31  ;;  %v487_v34 = vsel %vm224_vm5, %v475_v30, -inf }
 0x539   :  { %488 = vmax.xlane.f32.xlu0 %v487_v34  ;;  %v1751_v36 = vpop.f32.mrf.mxu1 }
 0x53a   :  { %v481_v38 = vsel %vm224_vm5, %v467_v33, -inf  ;;  %v478_v42 = vadd.f32 %v1751_v36, %v2254_v40 }
 0x53b   :  { %v469_v39 = vpop.f32.mrf.mxu1  ;;  %482 = vmax.xlane.f32.xlu1 %v481_v38 }
 0x53c   :  { %v470_v41 = vadd.f32 %v469_v39, %v2251_v37  ;;  %v490_v44 = vsel %vm224_vm5, %v478_v42, -inf }
 0x53e   :  { %v484_v43 = vsel %vm224_vm5, %v470_v41, -inf }
 0x53f   :  { %485 = vmax.xlane.f32.xlu0 %v484_v43 }
 0x543   :  { %491 = vmax.xlane.f32.xlu0 %v490_v44 }
 0x54c   :  { %527 = vrot.lane.b32.xlu1 %v412_v11, %s2001_s5 }
 0x5c2   :  { %v489_v45 = vpop.xlane.xlu0 %488 }
 0x5c3   :  { %v495_v46 = vsub.f32 %v475_v30, %v489_v45 }
 0x5c4   :  { %v483_v47 = vpop.xlane.xlu1 %482 }
 0x5c5   :  { %v501_v48 = vmul.f32 1.442695, %v495_v46  ;;  %v493_v49 = vsub.f32 %v467_v33, %v483_v47  ;;  %v1873_v46 = vld [vmem:[%s2480_s14] sm:$0xff]  }
 0x5c7   :  { %1892 = vpow2.f32 %v501_v48  ;;  %v497_v50 = vmul.f32 1.442695, %v493_v49 }
 0x5c8   :  { %v486_v51 = vpop.xlane.xlu0 %485  ;;  %v528_v9 = vpop.permute.xlu1 %527 }
 0x5c9   :  { %1894 = vpow2.f32 %v497_v50  ;;  %v494_v52 = vsub.f32 %v470_v41, %v486_v51 }
 0x5cb   :  { %v499_v55 = vmul.f32 1.442695, %v494_v52 }
 0x5cc   :  { %v492_v53 = vpop.xlane.xlu0 %491 }
 0x5cd   :  { %v496_v54 = vsub.f32 %v478_v42, %v492_v53 }
 0x5cf   :  { %v503_v56 = vmul.f32 1.442695, %v496_v54 }
 0x5d1   :  { %1896 = vpow2.f32 %v503_v56 }
 0x5d2   :  { %1898 = vpow2.f32 %v499_v55  ;;  %v1590_v55 = vld [vmem:[%s2478_s12] ss:$0 sm:$0xff] }
 0x5d4   :  { %v1893_v57 = vpop.eup %1892 }
 0x5d5   :  { %v511_v58 = vsel %vm224_vm5, %v1893_v57, 0.0 }
 0x5d6   :  { %v1895_v61 = vpop.eup %1894  ;;  %512 = vadd.xlane.f32.xlu0 %v511_v58 }
 0x5d7   :  { %v505_v62 = vsel %vm224_vm5, %v1895_v61, 0.0 }
 0x5da   :  { %506 = vadd.xlane.f32.xlu0 %v505_v62 }
 0x5de   :  { %v1897_v63 = vpop.eup %1896 }
 0x5df   :  { %v514_v0 = vsel %vm224_vm5, %v1897_v63, 0.0  ;;  %v1899_v1 = vpop.eup %1898 }
 0x5e0   :  { %515 = vadd.xlane.f32.xlu0 %v514_v0  ;;  %v508_v3 = vsel %vm224_vm5, %v1899_v1, 0.0 }
 0x5e4   :  { %509 = vadd.xlane.f32.xlu0 %v508_v3  ;;  %v1874_v3 = vld [vmem:[%s2482_s16 + $0x18] sm:$0xff]  }
 0x5fa   :  { %529 = vrot.lane.b32.xlu0 %v2217_v16, %s2001_s5 }
 0x65f   :  { %v513_v4 = vpop.xlane.xlu0 %512 }
 0x663   :  { %v507_v5 = vpop.xlane.xlu0 %506 }
 0x669   :  { %v516_v6 = vpop.xlane.xlu0 %515 }
 0x66a   :  { %1900 = vrcp.f32 %v516_v6  ;;  %v1877_v6 = vld [vmem:[%s2482_s16] sm:$0xff]  }
 0x66b   :  { %1902 = vrcp.f32 %v507_v5  ;;  %v1876_v5 = vld [vmem:[%s2482_s16 + $0x8] sm:$0xff]  }
 0x66c   :  { %1904 = vrcp.f32 %v513_v4  ;;  %v1875_v4 = vld [vmem:[%s2482_s16 + $0x10] sm:$0xff]  }
 0x66d   :  { %v510_v7 = vpop.xlane.xlu0 %509 }
 0x66e   :  { %1906 = vrcp.f32 %v510_v7  ;;  %v1592_v7 = vld [vmem:[%s2481_s15] ss:$0 sm:$0xff] }
 0x671   :  { %v530_v8 = vpop.permute.xlu0 %529 }
 0x672   :  { %1752 = vmatprep.subr.bf16.mxu0 %v530_v8 }
 0x673   :  { %1753 = vmatpush3.bf16.msra.mxu0 %v530_v8 }
 0x674   :  { %1754 = vmatprep.subr.bf16.mxu0 %v528_v9 }
 0x677   :  { %1755 = vmatpush3.bf16.msra.mxu0 %v528_v9  ;;  %v1901_v10 = vpop.eup %1900 }
 0x678   :  { %1768 = vmatprep.subr.bf16.mxu0 %v1997_v2  ;;  %v1903_v11 = vpop.eup %1902  ;;  %v524_v15 = vmul.f32 %v1901_v10, %v1897_v63 }
 0x679   :  { %v1905_v12 = vpop.eup %1904  ;;  %v521_v16 = vmul.f32 %v1903_v11, %v1895_v61  ;;  %v1591_v61 = vld [vmem:[%s2479_s13] ss:$0 sm:$0xff] }
 0x67a   :  { %v523_v18 = vmul.f32 %v1905_v12, %v1893_v57 }
 0x67b   :  { %v1907_v14 = vpop.eup %1906 }
 0x67c   :  { %v522_v17 = vmul.f32 %v1907_v14, %v1899_v1  ;;  %v526_v20 = vpack.c.bf16 %v524_v15, %v523_v18 }
 0x67e   :  { %v525_v19 = vpack.c.bf16 %v522_v17, %v521_v16 }
 0x680   :  { %1756 = vmatprep.mubr.msk.bf16.mxu0 %vm224_vm5, %v525_v19 }
 0x681   :  { %1757 = vmatmul.mubr.msk.bf16.vlgmr.msra.gmra.mxu0 %vm224_vm5, %v526_v20 }
 0x682   :  { %1776 = vmatprep.mubr.msk.bf16.mxu0 %vm1998_vm1, %v1997_v2  ;;  %1769 = vmatpush3.bf16.msra.mxu0 %v1874_v3 }
 0x683   :  { %1770 = vmatprep.subr.bf16.mxu0 %v1997_v2 }
 0x686   :  { %1771 = vmatpush3.bf16.msra.mxu0 %v1875_v4 }
 0x687   :  { %1772 = vmatprep.subr.bf16.mxu0 %v1997_v2 }
 0x68a   :  { %1773 = vmatpush3.bf16.msra.mxu0 %v1876_v5  ;;  %v1602_v5 = vld [vmem:[%s2484_s18] ss:$0 sm:$0xff] }
 0x68b   :  { %1774 = vmatprep.subr.bf16.mxu0 %v1997_v2 }
 0x68e   :  { %1775 = vmatpush3.bf16.msra.mxu0 %v1877_v6 }
 0x741   :  { %v1758_v21 = vpop.f32.mrf.mxu0 }
 0x743   :  { %v573_v22 = vpop.f32.mrf.mxu0 }
 0x744   :  { %v588_v24 = vadd.f32 %v1758_v21, %v573_v22 }
 0x745   :  { %v1759_v25 = vpop.f32.mrf.mxu0 }
 0x746   :  { %v597_v26 = vadd.f32 %v1589_v23, %v588_v24 }
 0x747   :  { %v576_v27 = vpop.f32.mrf.mxu0 }
 0x748   :  { %v589_v29 = vadd.f32 %v1759_v25, %v576_v27  ;;  %v599_v30 = vadd.f32 %v597_v26, %v2205_v59 }
 0x74a   :  { %v598_v32 = vadd.f32 %v1589_v23, %v589_v29  ;;  %v603_v13 = vsel %vm224_vm5, %v599_v30, 0.0 }
 0x74b   :  { %604 = vadd.xlane.f32.xlu0 %v603_v13 }
 0x74c   :  { %v600_v33 = vadd.f32 %v598_v32, %v2207_v60  ;;  %v1872_v60 = vld [vmem:[%s2480_s14 + $0x8] sm:$0xff]  }
 0x74d   :  { %1761 = vmatpush3.bf16.msra.mxu1 %v1872_v60 }
 0x74e   :  { %v606_v34 = vsel %vm224_vm5, %v600_v33, 0.0  ;;  %1762 = vmatprep.subr.bf16.mxu1 %v1997_v2 }
 0x74f   :  { %607 = vadd.xlane.f32.xlu1 %v606_v34 }
 0x751   :  { %1763 = vmatpush3.bf16.msra.mxu1 %v1873_v46 }
 0x752   :  { %1780 = vmatprep.subr.bf16.mxu1 %v1997_v2 }
 0x7d4   :  { %v605_v35 = vpop.xlane.xlu0 %604 }
 0x7d5   :  { %v609_v36 = vmul.f32 0.03125, %v605_v35  ;;  %v1596_v35 = vld [vmem:[%s2483_s17] ss:$0 sm:$0xff] }
 0x7d7   :  { %v611_v38 = vsub.f32 %v599_v30, %v609_v36 }
 0x7d8   :  { %v608_v39 = vpop.xlane.xlu1 %607 }
 0x7d9   :  { %v610_v41 = vmul.f32 0.03125, %v608_v39  ;;  %v613_v42 = vmul.f32 %v611_v38, %v611_v38 }
 0x7db   :  { %v612_v43 = vsub.f32 %v600_v33, %v610_v41  ;;  %v615_v44 = vsel %vm224_vm5, %v613_v42, 0.0 }
 0x7dc   :  { %616 = vadd.xlane.f32.xlu0 %v615_v44 }
 0x7dd   :  { %v614_v59 = vmul.f32 %v612_v43, %v612_v43 }
 0x7df   :  { %v618_v45 = vsel %vm224_vm5, %v614_v59, 0.0 }
 0x7e0   :  { %619 = vadd.xlane.f32.xlu0 %v618_v45 }
 0x865   :  { %v617_v47 = vpop.xlane.xlu0 %616 }
 0x866   :  { %v621_v48 = vmul.f32 0.03125, %v617_v47 }
 0x868   :  { %v623_v49 = vadd.f32 1e-12, %v621_v48 }
 0x869   :  { %v620_v50 = vpop.xlane.xlu0 %619 }
 0x86a   :  { %1908 = vrsqrt.f32 %v623_v49  ;;  %v622_v51 = vmul.f32 0.03125, %v620_v50 }
 0x86c   :  { %v624_v52 = vadd.f32 1e-12, %v622_v51 }
 0x86e   :  { %1910 = vrsqrt.f32 %v624_v52 }
 0x877   :  { %v1909_v53 = vpop.eup %1908 }
 0x878   :  { %v627_v54 = vmul.f32 %v1909_v53, %v611_v38 }
 0x87a   :  { %v635_v58 = vmul.f32 %v1590_v55, %v627_v54 }
 0x87b   :  { %v1911_v56 = vpop.eup %1910 }
 0x87c   :  { %v628_v57 = vmul.f32 %v1911_v56, %v612_v43  ;;  %v643_v63 = vadd.f32 %v1591_v61, %v635_v58  ;;  %v1878_v56 = vld [vmem:[%s2475_s9 + $0x18] sm:$0xff]  }
 0x87e   :  { %v636_v62 = vmul.f32 %v1590_v55, %v628_v57  ;;  %v1879_v57 = vld [vmem:[%s2475_s9 + $0x10] sm:$0xff]  }
 0x880   :  { %v644_v0 = vadd.f32 %v1591_v61, %v636_v62 }
 0x882   :  { %v649_v1 = vpack.c.bf16 %v644_v0, %v643_v63 }
 0x884   :  { %1765 = vmatmul.mubr.msk.bf16.vlgmr.msra.gmra.mxu1 %vm224_vm5, %v649_v1 }
 0x885   :  { %1784 = vmatprep.mubr.msk.bf16.mxu1 %vm1998_vm1, %v1997_v2  ;;  %1781 = vmatpush3.bf16.msra.mxu1 %v1878_v56 }
 0x886   :  { %1782 = vmatprep.subr.bf16.mxu1 %v1997_v2 }
 0x889   :  { %1783 = vmatpush3.bf16.msra.mxu1 %v1879_v57 }
 0x944   :  { %v706_v8 = vpop.f32.mrf.mxu1 }
 0x945   :  { %v707_v9 = vadd.f32 %v1592_v7, %v706_v8 }
 0x946   :  { %v1766_v10 = vpop.f32.mrf.mxu1 }
 0x947   :  { %v715_v11 = vmul.f32 0.044715, %v707_v9  ;;  %v713_v29 = vmul.f32 0.5, %v707_v9 }
 0x948   :  { %v709_v12 = vpop.f32.mrf.mxu1 }
 0x949   :  { %v717_v14 = vmul.f32 %v715_v11, %v707_v9  ;;  %v710_v15 = vadd.f32 %v1592_v7, %v709_v12 }
 0x94a   :  { %v1767_v16 = vpop.f32.mrf.mxu1 }
 0x94b   :  { %v719_v17 = vmul.f32 %v717_v14, %v707_v9  ;;  %v716_v18 = vmul.f32 0.044715, %v710_v15  ;;  %v714_v30 = vmul.f32 0.5, %v710_v15  ;;  %v1609_v16 = vld [vmem:[%s2476_s10 + $0x1] ss:$0 sm:$0xff] }
 0x94d   :  { %v721_v19 = vadd.f32 %v719_v17, %v707_v9  ;;  %v718_v20 = vmul.f32 %v716_v18, %v710_v15  ;;  %v1603_v9 = vld [vmem:[%s2485_s19] ss:$0 sm:$0xff] }
 0x94f   :  { %v723_v21 = vmul.f32 0.7978846, %v721_v19  ;;  %v720_v22 = vmul.f32 %v718_v20, %v710_v15 }
 0x951   :  { %1912 = vtanh.f32 %v723_v21  ;;  %v722_v23 = vadd.f32 %v720_v22, %v710_v15 }
 0x953   :  { %v724_v24 = vmul.f32 0.7978846, %v722_v23 }
 0x955   :  { %1914 = vtanh.f32 %v724_v24 }
 0x95e   :  { %v1913_v25 = vpop.eup %1912 }
 0x95f   :  { %v727_v26 = vadd.f32 1.0, %v1913_v25 }
 0x961   :  { %v729_v13 = vmul.f32 %v727_v26, %v713_v29 }
 0x962   :  { %v1915_v27 = vpop.eup %1914 }
 0x963   :  { %v728_v32 = vadd.f32 1.0, %v1915_v27 }
 0x965   :  { %v730_v33 = vmul.f32 %v728_v32, %v714_v30 }
 0x967   :  { %v739_v34 = vpack.c.bf16 %v730_v33, %v729_v13 }
 0x969   :  { %1777 = vmatmul.mubr.msk.bf16.vlgmr.msra.gmra.mxu0 %vm771_vm7, %v739_v34 }
 0xa29   :  { %v809_v36 = vpop.f32.mrf.mxu0 }
 0xa2a   :  { %v810_v38 = vadd.f32 %v1596_v35, %v809_v36 }
 0xa2b   :  { %v1778_v39 = vpop.f32.mrf.mxu0 }
 0xa2c   :  { %v816_v41 = vadd.f32 %v810_v38, %v643_v63 }
 0xa2d   :  { %v812_v42 = vpop.f32.mrf.mxu0 }
 0xa2e   :  { %v813_v43 = vadd.f32 %v1596_v35, %v812_v42  ;;  %v820_v44 = vsel %vm224_vm5, %v816_v41, 0.0 }
 0xa2f   :  { %821 = vadd.xlane.f32.xlu1 %v820_v44  ;;  %v1779_v59 = vpop.f32.mrf.mxu0 }
 0xa30   :  { %v817_v45 = vadd.f32 %v813_v43, %v644_v0 }
 0xa32   :  { %v823_v60 = vsel %vm224_vm5, %v817_v45, 0.0 }
 0xa33   :  { %824 = vadd.xlane.f32.xlu0 %v823_v60 }
 0xab8   :  { %v822_v46 = vpop.xlane.xlu1 %821 }
 0xab9   :  { %v826_v47 = vmul.f32 0.03125, %v822_v46 }
 0xabb   :  { %v828_v48 = vsub.f32 %v816_v41, %v826_v47 }
 0xabc   :  { %v825_v49 = vpop.xlane.xlu0 %824 }
 0xabd   :  { %v827_v50 = vmul.f32 0.03125, %v825_v49  ;;  %v830_v51 = vmul.f32 %v828_v48, %v828_v48 }
 0xabf   :  { %v829_v52 = vsub.f32 %v817_v45, %v827_v50  ;;  %v832_v53 = vsel %vm224_vm5, %v830_v51, 0.0 }
 0xac0   :  { %833 = vadd.xlane.f32.xlu1 %v832_v53 }
 0xac1   :  { %v831_v54 = vmul.f32 %v829_v52, %v829_v52 }
 0xac3   :  { %v835_v55 = vsel %vm224_vm5, %v831_v54, 0.0 }
 0xac4   :  { %836 = vadd.xlane.f32.xlu0 %v835_v55 }
 0xb49   :  { %v834_v58 = vpop.xlane.xlu1 %833 }
 0xb4a   :  { %v838_v61 = vmul.f32 0.03125, %v834_v58 }
 0xb4c   :  { %v840_v62 = vadd.f32 1e-12, %v838_v61 }
 0xb4d   :  { %v837_v63 = vpop.xlane.xlu0 %836 }
 0xb4e   :  { %1916 = vrsqrt.f32 %v840_v62  ;;  %v839_v0 = vmul.f32 0.03125, %v837_v63 }
 0xb50   :  { %v841_v1 = vadd.f32 1e-12, %v839_v0 }
 0xb52   :  { %1918 = vrsqrt.f32 %v841_v1 }
 0xb5b   :  { %v1917_v3 = vpop.eup %1916 }
 0xb5c   :  { %v844_v4 = vmul.f32 %v1917_v3, %v828_v48 }
 0xb5e   :  { %v852_v8 = vmul.f32 %v1602_v5, %v844_v4 }
 0xb5f   :  { %v1919_v6 = vpop.eup %1918 }
 0xb60   :  { %v845_v7 = vmul.f32 %v1919_v6, %v829_v52  ;;  %v2337_v11 = vadd.f32 %v1603_v9, %v852_v8 }
 0xb62   :  { %v853_v10 = vmul.f32 %v1602_v5, %v845_v7 }
 0xb64   :  { %v2339_v12 = vadd.f32 %v1603_v9, %v853_v10 }
 0xb66   :  { %v867_v14 = vpack.c.bf16 %v2339_v12, %v2337_v11 }
 0xb68   :  { %1785 = vmatmul.mubr.msk.bf16.vlgmr.msra.gmra.mxu1 %vm224_vm5, %v867_v14 }
 0xc28   :  { %v925_v15 = vpop.f32.mrf.mxu1 }
 0xc29   :  { %v926_v19 = vadd.f32 %v1609_v16, %v925_v15 }
 0xc2a   :  { %v1786_v17 = vpop.f32.mrf.mxu1 }
 0xc2c   :  { %v928_v18 = vpop.f32.mrf.mxu1 }
 0xc2d   :  { %v929_v20 = vadd.f32 %v1609_v16, %v928_v18 }
 0xc2e   :  { %v1787_v21 = vpop.f32.mrf.mxu1 }
 0xc2f   :  { %v1857_v22 = vpack.i.bf16 %v929_v20, %v926_v19  ;;  %v2347_v23 = vpack.c.bf16 %v929_v20, %v926_v19  ;;  %v1618_v21 = vld [vmem:[%s2477_s11 + $0x1] ss:$0 sm:$0xff] }
 0xc31   :  { %1858 = vrot.lane.b32.xlu1 %v1857_v22, %s1999_s2  ;;  %1792 = vmatprep.mubr.msk.bf16.mxu1 %vm278_vm6, %v2347_v23 }
 0xc35   :  { %944 = vrot.lane.b32.xlu1 %v2347_v23, %s2000_s29 }
 0xca3   :  { %v1859_v24 = vpop.permute.xlu1 %1858 }
 0xca4   :  { %v1861_v25 = vunpack.i.h.bf16 %v1859_v24  ;;  %v1860_v26 = vunpack.i.l.bf16 %v1859_v24 }
 0xca6   :  { %v941_v27 = vpack.c.bf16 %v1861_v25, %v1860_v26 }
 0xca7   :  { %v945_v32 = vpop.permute.xlu1 %944 }
 0xca8   :  { %946 = vrot.lane.b32.xlu0 %v941_v27, %s2000_s29  ;;  %v955_v13 = vsel %vm278_vm6, %v945_v32, 0 }
 0xd1a   :  { %v947_v29 = vpop.permute.xlu0 %946 }
 0xd1b   :  { %v958_v30 = vsel %vm278_vm6, %v947_v29, 0  ;;  %1841 = vmatprep.subr.msk.bf16.mxu1 %vm278_vm6, %v947_v29 }
 0xd1c   :  { %1789 = vmatpush3.bf16.xpose.msra.mxu1 %v958_v30 }
 0xd1d   :  { %1842 = vmatprep.subr.msk.bf16.mxu1 %vm278_vm6, %v945_v32 }
 0xd24   :  { %1791 = vmatpush3.bf16.xpose.msra.mxu1 %v955_v13 }
 0xd25   :  { %1812 = vmatprep.subr.bf16.mxu1 %v1997_v2 }
 0xd2b   :  { %1793 = vmatmul.mubr.msk.bf16.vlgmr.msra.gmra.mxu1 %vm278_vm6, %v941_v27 }
 0xd2c   :  { %1820 = vmatprep.mubr.msk.bf16.mxu1 %vm1998_vm1, %v1997_v2 }
 0xdeb   :  { %v1794_v33 = vpop.f32.mrf.mxu1 }
 0xdec   :  { %v1003_v43 = vadd.f32 %v1794_v33, %v2238_v28 }
 0xded   :  { %v994_v34 = vpop.f32.mrf.mxu1 }
 0xdee   :  { %v995_v35 = vadd.f32 %v994_v34, %v2241_v31  ;;  %v1015_v45 = vsel %vm224_vm5, %v1003_v43, -inf }
 0xdef   :  { %v1795_v36 = vpop.f32.mrf.mxu1 }
 0xdf0   :  { %v1006_v38 = vadd.f32 %v1795_v36, %v2254_v40  ;;  %v1009_v39 = vsel %vm224_vm5, %v995_v35, -inf }
 0xdf1   :  { %v997_v41 = vpop.f32.mrf.mxu1  ;;  %1010 = vmax.xlane.f32.xlu1 %v1009_v39 }
 0xdf2   :  { %v998_v42 = vadd.f32 %v997_v41, %v2251_v37  ;;  %v1018_v59 = vsel %vm224_vm5, %v1006_v38, -inf }
 0xdf4   :  { %v1012_v44 = vsel %vm224_vm5, %v998_v42, -inf }
 0xdf5   :  { %1013 = vmax.xlane.f32.xlu0 %v1012_v44  ;;  %1019 = vmax.xlane.f32.xlu1 %v1018_v59  ;;  %v1881_v44 = vld [vmem:[%s2480_s14 + $0x10] sm:$0xff]  }
 0xdf9   :  { %1016 = vmax.xlane.f32.xlu0 %v1015_v45 }
 0xe7a   :  { %v1011_v31 = vpop.xlane.xlu1 %1010 }
 0xe7b   :  { %v1021_v48 = vsub.f32 %v995_v35, %v1011_v31 }
 0xe7d   :  { %v1025_v28 = vmul.f32 1.442695, %v1021_v48 }
 0xe7e   :  { %v1014_v60 = vpop.xlane.xlu0 %1013  ;;  %v1020_v40 = vpop.xlane.xlu1 %1019 }
 0xe7f   :  { %v1022_v46 = vsub.f32 %v998_v42, %v1014_v60  ;;  %v1024_v47 = vsub.f32 %v1006_v38, %v1020_v40 }
 0xe81   :  { %v1031_v49 = vmul.f32 1.442695, %v1024_v47  ;;  %v1027_v50 = vmul.f32 1.442695, %v1022_v46 }
 0xe82   :  { %v1017_v37 = vpop.xlane.xlu0 %1016 }
 0xe83   :  { %v1023_v51 = vsub.f32 %v1003_v43, %v1017_v37  ;;  %1920 = vpow2.f32 %v1031_v49  ;;  %v1621_v49 = vld [vmem:[%s2478_s12 + $0x1] ss:$0 sm:$0xff] }
 0xe84   :  { %1922 = vpow2.f32 %v1027_v50 }
 0xe85   :  { %v1029_v52 = vmul.f32 1.442695, %v1023_v51 }
 0xe87   :  { %1924 = vpow2.f32 %v1029_v52 }
 0xe88   :  { %1926 = vpow2.f32 %v1025_v28  ;;  %v1622_v28 = vld [vmem:[%s2479_s13 + $0x1] ss:$0 sm:$0xff] }
 0xe90   :  { %v1921_v53 = vpop.eup %1920 }
 0xe91   :  { %v1042_v54 = vsel %vm224_vm5, %v1921_v53, 0.0  ;;  %v1923_v55 = vpop.eup %1922 }
 0xe92   :  { %1043 = vadd.xlane.f32.xlu1 %v1042_v54  ;;  %v1036_v61 = vsel %vm224_vm5, %v1923_v55, 0.0 }
 0xe94   :  { %v1925_v56 = vpop.eup %1924 }
 0xe95   :  { %v1039_v57 = vsel %vm224_vm5, %v1925_v56, 0.0  ;;  %v1927_v58 = vpop.eup %1926 }
 0xe96   :  { %1040 = vadd.xlane.f32.xlu0 %v1039_v57  ;;  %1037 = vadd.xlane.f32.xlu1 %v1036_v61  ;;  %v1033_v62 = vsel %vm224_vm5, %v1927_v58, 0.0  ;;  %v1883_v57 = vld [vmem:[%s2482_s16 + $0x30] sm:$0xff]   ;;  %v1885_v61 = vld [vmem:[%s2482_s16 + $0x20] sm:$0xff]  }
 0xe9a   :  { %1034 = vadd.xlane.f32.xlu0 %v1033_v62  ;;  %v1628_v62 = vld [vmem:[%s2481_s15 + $0x1] ss:$0 sm:$0xff] }
 0xea7   :  { %1055 = vrot.lane.b32.xlu1 %v2347_v23, %s2001_s5 }
 0xeb0   :  { %1057 = vrot.lane.b32.xlu0 %v941_v27, %s2001_s5 }
 0xf1b   :  { %v1044_v63 = vpop.xlane.xlu1 %1043 }
 0xf1f   :  { %v1041_v0 = vpop.xlane.xlu0 %1040  ;;  %v1038_v1 = vpop.xlane.xlu1 %1037 }
 0xf20   :  { %1928 = vrcp.f32 %v1041_v0 }
 0xf21   :  { %1930 = vrcp.f32 %v1038_v1 }
 0xf22   :  { %1932 = vrcp.f32 %v1044_v63 }
 0xf23   :  { %v1035_v3 = vpop.xlane.xlu0 %1034  ;;  %v1056_v5 = vpop.permute.xlu1 %1055 }
 0xf24   :  { %1934 = vrcp.f32 %v1035_v3 }
 0xf27   :  { %v1058_v4 = vpop.permute.xlu0 %1057 }
 0xf28   :  { %1796 = vmatprep.subr.bf16.mxu0 %v1058_v4 }
 0xf29   :  { %1797 = vmatpush3.bf16.msra.mxu0 %v1058_v4 }
 0xf2a   :  { %1798 = vmatprep.subr.bf16.mxu0 %v1056_v5 }
 0xf2d   :  { %1799 = vmatpush3.bf16.msra.mxu0 %v1056_v5  ;;  %v1929_v6 = vpop.eup %1928 }
 0xf2e   :  { %1804 = vmatprep.subr.bf16.mxu0 %v1997_v2  ;;  %v1931_v7 = vpop.eup %1930  ;;  %v1051_v10 = vmul.f32 %v1929_v6, %v1925_v56  ;;  %v1882_v56 = vld [vmem:[%s2482_s16 + $0x38] sm:$0xff]  }
 0xf2f   :  { %v1933_v8 = vpop.eup %1932  ;;  %v1050_v15 = vmul.f32 %v1931_v7, %v1923_v55  ;;  %1813 = vmatpush3.bf16.msra.mxu1 %v1882_v56 }
 0xf30   :  { %v1052_v16 = vmul.f32 %v1933_v8, %v1921_v53  ;;  %1814 = vmatprep.subr.bf16.mxu1 %v1997_v2 }
 0xf31   :  { %v1935_v9 = vpop.eup %1934 }
 0xf32   :  { %v1049_v14 = vmul.f32 %v1935_v9, %v1927_v58  ;;  %v1054_v18 = vpack.c.bf16 %v1052_v16, %v1051_v10  ;;  %v1884_v58 = vld [vmem:[%s2482_s16 + $0x28] sm:$0xff]  }
 0xf33   :  { %1815 = vmatpush3.bf16.msra.mxu1 %v1883_v57 }
 0xf34   :  { %v1053_v17 = vpack.c.bf16 %v1050_v15, %v1049_v14  ;;  %1816 = vmatprep.subr.bf16.mxu1 %v1997_v2 }
 0xf36   :  { %1800 = vmatprep.mubr.msk.bf16.mxu0 %vm224_vm5, %v1053_v17 }
 0xf37   :  { %1801 = vmatmul.mubr.msk.bf16.vlgmr.msra.gmra.mxu0 %vm224_vm5, %v1054_v18  ;;  %1817 = vmatpush3.bf16.msra.mxu1 %v1884_v58  ;;  %v1650_v58 = vld [vmem:[%s2485_s19 + $0x1] ss:$0 sm:$0xff] }
 0xf38   :  { %1808 = vmatprep.mubr.msk.bf16.mxu0 %vm1998_vm1, %v1997_v2  ;;  %1818 = vmatprep.subr.bf16.mxu1 %v1997_v2 }
 0xf3b   :  { %1819 = vmatpush3.bf16.msra.mxu1 %v1885_v61 }
 0xf3c   :  { %1824 = vmatprep.subr.mxu1 %v1997_v2 }
 0xff7   :  { %v1802_v19 = vpop.f32.mrf.mxu0 }
 0xff9   :  { %v1101_v20 = vpop.f32.mrf.mxu0 }
 0xffa   :  { %v1116_v22 = vadd.f32 %v1802_v19, %v1101_v20 }
 0xffb   :  { %v1803_v23 = vpop.f32.mrf.mxu0 }
 0xffc   :  { %v1126_v24 = vadd.f32 %v1618_v21, %v1116_v22 }
 0xffd   :  { %v1104_v25 = vpop.f32.mrf.mxu0 }
 0xffe   :  { %v1117_v26 = vadd.f32 %v1803_v23, %v1104_v25  ;;  %v1128_v27 = vadd.f32 %v1126_v24, %v2337_v11 }
0x1000   :  { %v1127_v29 = vadd.f32 %v1618_v21, %v1117_v26  ;;  %v1134_v30 = vsel %vm224_vm5, %v1128_v27, 0.0 }
0x1001   :  { %1135 = vadd.xlane.f32.xlu1 %v1134_v30 }
0x1002   :  { %v1129_v32 = vadd.f32 %v1127_v29, %v2339_v12  ;;  %v1880_v12 = vld [vmem:[%s2480_s14 + $0x18] sm:$0xff]   ;;  %v1641_v29 = vld [vmem:[%s2483_s17 + $0x1] ss:$0 sm:$0xff] }
0x1003   :  { %1805 = vmatpush3.bf16.msra.mxu0 %v1880_v12 }
0x1004   :  { %v1137_v13 = vsel %vm224_vm5, %v1129_v32, 0.0  ;;  %1806 = vmatprep.subr.bf16.mxu0 %v1997_v2 }
0x1005   :  { %1138 = vadd.xlane.f32.xlu0 %v1137_v13 }
0x1007   :  { %1807 = vmatpush3.bf16.msra.mxu0 %v1881_v44 }
0x1008   :  { %1831 = vmatprep.subr.bf16.mxu0 %v1997_v2 }
0x108a   :  { %v1136_v33 = vpop.xlane.xlu1 %1135 }
0x108b   :  { %v1140_v34 = vmul.f32 0.03125, %v1136_v33 }
0x108d   :  { %v1142_v35 = vsub.f32 %v1128_v27, %v1140_v34 }
0x108e   :  { %v1139_v36 = vpop.xlane.xlu0 %1138 }
0x108f   :  { %v1141_v38 = vmul.f32 0.03125, %v1139_v36  ;;  %v1144_v39 = vmul.f32 %v1142_v35, %v1142_v35 }
0x1091   :  { %v1143_v41 = vsub.f32 %v1129_v32, %v1141_v38  ;;  %v1146_v42 = vsel %vm224_vm5, %v1144_v39, 0.0 }
0x1092   :  { %1147 = vadd.xlane.f32.xlu0 %v1146_v42 }
0x1093   :  { %v1145_v11 = vmul.f32 %v1143_v41, %v1143_v41 }
0x1095   :  { %v1149_v43 = vsel %vm224_vm5, %v1145_v11, 0.0 }
0x1096   :  { %1150 = vadd.xlane.f32.xlu1 %v1149_v43 }
0x111b   :  { %v1148_v59 = vpop.xlane.xlu0 %1147 }
0x111c   :  { %v1152_v45 = vmul.f32 0.03125, %v1148_v59 }
0x111e   :  { %v1154_v31 = vadd.f32 1e-12, %v1152_v45 }
0x111f   :  { %v1151_v60 = vpop.xlane.xlu1 %1150 }
0x1120   :  { %1936 = vrsqrt.f32 %v1154_v31  ;;  %v1153_v40 = vmul.f32 0.03125, %v1151_v60 }
0x1122   :  { %v1155_v46 = vadd.f32 1e-12, %v1153_v40 }
0x1124   :  { %1938 = vrsqrt.f32 %v1155_v46  ;;  %v1886_v46 = vld [vmem:[%s2486_s20 + $0x8] sm:$0xff]  }
0x112d   :  { %v1937_v47 = vpop.eup %1936 }
0x112e   :  { %v1158_v48 = vmul.f32 %v1937_v47, %v1142_v35 }
0x1130   :  { %v1166_v51 = vmul.f32 %v1621_v49, %v1158_v48 }
0x1131   :  { %v1939_v50 = vpop.eup %1938 }
0x1132   :  { %v1159_v37 = vmul.f32 %v1939_v50, %v1143_v41  ;;  %v1174_v53 = vadd.f32 %v1622_v28, %v1166_v51 }
0x1134   :  { %v1167_v52 = vmul.f32 %v1621_v49, %v1159_v37 }
0x1136   :  { %v1175_v54 = vadd.f32 %v1622_v28, %v1167_v52 }
0x1138   :  { %v1181_v55 = vpack.c.bf16 %v1175_v54, %v1174_v53 }
0x113a   :  { %1809 = vmatmul.mubr.msk.bf16.vlgmr.msra.gmra.mxu0 %vm224_vm5, %v1181_v55 }
0x113b   :  { %1835 = vmatprep.mubr.msk.bf16.mxu0 %vm1998_vm1, %v1997_v2  ;;  %1832 = vmatpush3.bf16.msra.mxu0 %v1886_v46 }
0x113c   :  { %1833 = vmatprep.subr.bf16.mxu0 %v1997_v2 }
0x11fa   :  { %v1239_v63 = vpop.f32.mrf.mxu0 }
0x11fb   :  { %v1240_v0 = vadd.f32 %v1628_v62, %v1239_v63  ;;  %v1398_v63 = vld [vmem:[%s2512_s7] sm:$0x3] }
0x11fc   :  { %v1810_v1 = vpop.f32.mrf.mxu0 }
0x11fd   :  { %v1248_v3 = vmul.f32 0.044715, %v1240_v0  ;;  %v1246_v22 = vmul.f32 0.5, %v1240_v0 }
0x11fe   :  { %v1242_v4 = vpop.f32.mrf.mxu0 }
0x11ff   :  { %v1250_v5 = vmul.f32 %v1248_v3, %v1240_v0  ;;  %v1243_v6 = vadd.f32 %v1628_v62, %v1242_v4 }
0x1200   :  { %v1811_v7 = vpop.f32.mrf.mxu0 }
0x1201   :  { %v1252_v8 = vmul.f32 %v1250_v5, %v1240_v0  ;;  %v1249_v9 = vmul.f32 0.044715, %v1243_v6  ;;  %v1247_v23 = vmul.f32 0.5, %v1243_v6  ;;  %v1652_v5 = vld [vmem:[%s2487_s21] ss:$0 sm:$0xff] }
0x1203   :  { %v1254_v10 = vadd.f32 %v1252_v8, %v1240_v0  ;;  %v1251_v14 = vmul.f32 %v1249_v9, %v1243_v6  ;;  %v1887_v0 = vld [vmem:[%s2486_s20] sm:$0xff]  }
0x1204   :  { %1834 = vmatpush3.bf16.msra.mxu0 %v1887_v0 }
0x1205   :  { %v1256_v15 = vmul.f32 0.7978846, %v1254_v10  ;;  %v1253_v16 = vmul.f32 %v1251_v14, %v1243_v6  ;;  %v1656_v10 = vld [vmem:[%s2488_s22] ss:$0 sm:$0xff] }
0x1207   :  { %1940 = vtanh.f32 %v1256_v15  ;;  %v1255_v17 = vadd.f32 %v1253_v16, %v1243_v6 }
0x1209   :  { %v1257_v18 = vmul.f32 0.7978846, %v1255_v17  ;;  %v1657_v17 = vld [vmem:[#allocation2] ss:$0 sm:$0xff] }
0x120b   :  { %1942 = vtanh.f32 %v1257_v18 }
0x1214   :  { %v1941_v19 = vpop.eup %1940 }
0x1215   :  { %v1260_v20 = vadd.f32 1.0, %v1941_v19 }
0x1217   :  { %v1262_v25 = vmul.f32 %v1260_v20, %v1246_v22 }
0x1218   :  { %v1943_v21 = vpop.eup %1942 }
0x1219   :  { %v1261_v24 = vadd.f32 1.0, %v1943_v21 }
0x121b   :  { %v1263_v26 = vmul.f32 %v1261_v24, %v1247_v23 }
0x121d   :  { %v1273_v27 = vpack.c.bf16 %v1263_v26, %v1262_v25 }
0x121f   :  { %1821 = vmatmul.mubr.msk.bf16.vlgmr.msra.gmra.mxu1 %vm771_vm7, %v1273_v27 }
0x1220   :  { %1828 = vmatprep.mubr.msk.f32.mxu1 %vm1998_vm1, %v1997_v2 }
0x12df   :  { %v1343_v30 = vpop.f32.mrf.mxu1 }
0x12e0   :  { %v1344_v32 = vadd.f32 %v1641_v29, %v1343_v30 }
0x12e1   :  { %v1822_v13 = vpop.f32.mrf.mxu1 }
0x12e2   :  { %v1350_v33 = vadd.f32 %v1344_v32, %v1174_v53 }
0x12e3   :  { %v1346_v34 = vpop.f32.mrf.mxu1 }
0x12e4   :  { %v1347_v35 = vadd.f32 %v1641_v29, %v1346_v34  ;;  %v1356_v36 = vsel %vm224_vm5, %v1350_v33, 0.0 }
0x12e5   :  { %1357 = vadd.xlane.f32.xlu1 %v1356_v36  ;;  %v1823_v38 = vpop.f32.mrf.mxu1 }
0x12e6   :  { %v1351_v39 = vadd.f32 %v1347_v35, %v1175_v54  ;;  %v1649_v54 = vld [vmem:[%s2484_s18 + $0x1] ss:$0 sm:$0xff] }
0x12e8   :  { %v1359_v41 = vsel %vm224_vm5, %v1351_v39, 0.0 }
0x12e9   :  { %1360 = vadd.xlane.f32.xlu0 %v1359_v41 }
0x136e   :  { %v1358_v42 = vpop.xlane.xlu1 %1357 }
0x136f   :  { %v1362_v11 = vmul.f32 0.03125, %v1358_v42 }
0x1371   :  { %v1364_v43 = vsub.f32 %v1350_v33, %v1362_v11 }
0x1372   :  { %v1361_v12 = vpop.xlane.xlu0 %1360 }
0x1373   :  { %v1363_v44 = vmul.f32 0.03125, %v1361_v12  ;;  %v1366_v59 = vmul.f32 %v1364_v43, %v1364_v43 }
0x1375   :  { %v1365_v45 = vsub.f32 %v1351_v39, %v1363_v44  ;;  %v1368_v31 = vsel %vm224_vm5, %v1366_v59, 0.0 }
0x1376   :  { %1369 = vadd.xlane.f32.xlu1 %v1368_v31 }
0x1377   :  { %v1367_v60 = vmul.f32 %v1365_v45, %v1365_v45 }
0x1379   :  { %v1371_v40 = vsel %vm224_vm5, %v1367_v60, 0.0 }
0x137a   :  { %1372 = vadd.xlane.f32.xlu0 %v1371_v40 }
0x13ff   :  { %v1370_v47 = vpop.xlane.xlu1 %1369 }
0x1400   :  { %v1374_v48 = vmul.f32 0.03125, %v1370_v47 }
0x1402   :  { %v1376_v49 = vadd.f32 1e-12, %v1374_v48 }
0x1403   :  { %v1373_v50 = vpop.xlane.xlu0 %1372 }
0x1404   :  { %1944 = vrsqrt.f32 %v1376_v49  ;;  %v1375_v37 = vmul.f32 0.03125, %v1373_v50 }
0x1406   :  { %v1377_v51 = vadd.f32 1e-12, %v1375_v37 }
0x1408   :  { %1946 = vrsqrt.f32 %v1377_v51 }
0x1411   :  { %v1945_v28 = vpop.eup %1944 }
0x1412   :  { %v1380_v52 = vmul.f32 %v1945_v28, %v1364_v43 }
0x1414   :  { %v1388_v57 = vmul.f32 %v1649_v54, %v1380_v52 }
0x1415   :  { %v1947_v53 = vpop.eup %1946 }
0x1416   :  { %v1381_v55 = vmul.f32 %v1947_v53, %v1365_v45  ;;  %v1396_v62 = vadd.f32 %v1650_v58, %v1388_v57 }
0x1418   :  { %v1389_v56 = vmul.f32 %v1649_v54, %v1381_v55 }
0x141a   :  { %v1397_v61 = vadd.f32 %v1650_v58, %v1389_v56 }
0x141c   :  { %1825 = vmatpush3.msra.mxu1 %v1397_v61 }
0x141d   :  { %1826 = vmatprep.subr.mxu1 %v1997_v2 }
0x141e   :  { %1827 = vmatpush3.msra.mxu1 %v1396_v62 }
0x141f   :  { %1829 = vmatmul.mubr.msk.f32.vlgmr.msra.gmra.mxu1 %vm278_vm6, %v1398_v63 }
0x14df   :  { %v1468_v1 = vpop.f32.mrf.mxu1 }
0x14e0   :  { %v1476_v3 = vpack.c.bf16 %v1468_v1, %v1468_v1 }
0x14e1   :  { %v1830_v4 = vpop.f32.mrf.mxu1 }
0x14e2   :  { %1836 = vmatmul.mubr.msk.bf16.vlgmr.msra.gmra.mxu0 %vm224_vm5, %v1476_v3 }
0x15a2   :  { %v1533_v6 = vpop.f32.mrf.mxu0 }
0x15a3   :  { %v1534_v7 = vadd.f32 %v1652_v5, %v1533_v6 }
0x15a4   :  { %v1837_v2 = vpop.f32.mrf.mxu0 }
0x15a5   :  { %1948 = vtanh.f32 %v1534_v7 }
0x15a6   :  { %v1536_v8 = vpop.f32.mrf.mxu0 }
0x15a8   :  { %v1838_v9 = vpop.f32.mrf.mxu0 }
0x15b2   :  { %v1949_v14 = vpop.eup %1948 }
0x15b3   :  { %v1547_v15 = vmul.f32 %v1949_v14, %v1656_v10 }
0x15b5   :  { %v1549_v16 = vsel %vm1548_vm8, %v1547_v15, 0.0 }
0x15b6   :  { %1550 = vadd.xlane.f32.xlu0 %v1549_v16 }
0x163f   :  { %v1551_v18 = vpop.xlane.xlu0 %1550 }
0x1640   :  { %v1559_v19 = vadd.f32 %v1657_v17, %v1551_v18 }
0x1642   :  { %1561 = vst.msk [vmem:[%s2490_s24] sm:$0x3] %vm1560_vm9, %v1559_v19 }
0x1643   :  { %1566 = vsyncpa [#allocation4], 1 }
0x1644   :  { %1567 = vsyncpa [#allocation6], 1 }

</bundles_post_ra>
